<compile_context>
chip_gen: v6e
topology: v6e:2x2x1
jax: 0.10.0
libtpu: 0.0.40
codegen_flags: <defaults>
</compile_context>

<pallas_src>
import jax
import jax.numpy as jnp
from jax.experimental import pallas as pl
from jax.experimental.pallas import tpu as pltpu


def _round_up(x, m):
    return ((x + m - 1) // m) * m


def _default_fuse_layer2():
    """256-deep fusions pay off on v6e/v7x MXUs; keep 128-wide matmuls on <= v5."""
    try:
        kind = jax.devices()[0].device_kind.lower()
    except Exception:
        return True
    return not any(t in kind for t in ("v2", "v3", "v4", "v5"))


# ----------------------------------------------------------------------------- kernels


def _kernel_split(xr_ref, xd_ref,
                  w1_ref, b1_ref, w2_ref, b2_ref,
                  wd1_ref, bd1_ref, wd2_ref, bd2_ref,
                  wm1r_ref, wm1d_ref, bm1_ref, wm2_ref, bm2_ref,
                  out_ref):
    """128-wide matmuls (native tiles for v5e's 4x128^2 MXU)."""
    f32 = jnp.float32
    cdt = w1_ref.dtype                       # matmul operand dtype (f32 or bf16)
    relu = lambda v: jnp.maximum(v, 0.0)

    # RDF branch: Linear(rdf, H) -> ReLU -> Linear(H, H) -> ReLU (MXU, f32 accumulation)
    xr = xr_ref[...].astype(cdt)             # in-kernel cast: no extra HBM pass for x_rdf
    h = relu(jnp.dot(xr, w1_ref[...], preferred_element_type=f32) + b1_ref[...])
    h = relu(jnp.dot(h.astype(cdt), w2_ref[...], preferred_element_type=f32) + b2_ref[...])

    # Density branch: Linear(1, Hh) is a broadcast scalar affine -> VPU, f32, lane-padded.
    d = relu(xd_ref[...] * wd1_ref[...] + bd1_ref[...])
    d = relu(jnp.dot(d.astype(cdt), wd2_ref[...], preferred_element_type=f32) + bd2_ref[...])

    # Merged head: concat([h, d]) @ Wm1 == h @ Wm1[:H] + d @ Wm1[H:]
    m = relu(jnp.dot(h.astype(cdt), wm1r_ref[...], preferred_element_type=f32)
             + jnp.dot(d.astype(cdt), wm1d_ref[...], preferred_element_type=f32)
             + bm1_ref[...])

    # Final Linear(H, 1): VPU multiply + lane reduction (avoids an N=1 MXU matmul).
    out_ref[...] = jnp.sum(m * wm2_ref[...], axis=-1, keepdims=True) + bm2_ref[...]


def _kernel_fused(xr_ref, xd_ref,
                  w1_ref, b1_ref, wd1_ref, bd1_ref,
                  w2bd_ref, b2bd_ref, wm1_ref, bm1_ref, wm2_ref, bm2_ref,
                  out_ref):
    """256-deep matmuls for v6e/v7x (block-diag layer-2 + K-concat merged head)."""
    f32 = jnp.float32
    cdt = w1_ref.dtype
    relu = lambda v: jnp.maximum(v, 0.0)

    xr = xr_ref[...].astype(cdt)
    h1 = relu(jnp.dot(xr, w1_ref[...], preferred_element_type=f32) + b1_ref[...])
    d1 = relu(xd_ref[...] * wd1_ref[...] + bd1_ref[...])          # (TB, HhP) f32, VPU affine

    # Lane-concat once; the padded density columns are exactly zero, so the block-diag
    # weights below reproduce the reference math bit-for-bit (adding exact zeros).
    hd1 = jnp.concatenate([h1.astype(cdt), d1.astype(cdt)], axis=-1)          # (TB, H+HhP)
    hd2 = relu(jnp.dot(hd1, w2bd_ref[...], preferred_element_type=f32) + b2bd_ref[...])

    m = relu(jnp.dot(hd2.astype(cdt), wm1_ref[...], preferred_element_type=f32) + bm1_ref[...])
    out_ref[...] = jnp.sum(m * wm2_ref[...], axis=-1, keepdims=True) + bm2_ref[...]


# ----------------------------------------------------------------------------- wrapper


def rdf_density_mlp(x_rdf, x_density, params, *, block_b=2048,
                    vmem_budget_bytes=40 * 1024 * 1024):
    """params: output of prepare_kernel_params(). Returns (B, 1) f32 energies."""
    fused = (len(params) == 10)
    B, rdf_size = x_rdf.shape
    if x_density.dtype != jnp.float32:
        x_density = x_density.astype(jnp.float32)

    if fused:
        (w1, b1, wd1, bd1, w2bd, b2bd, wm1, bm1, wm2_row, bm2) = params
        H = w1.shape[1]
        merged = w2bd.shape[0]                    # H + HhP
    else:
        (w1, b1, w2, b2, wd1, bd1, wd2, bd2, wm1r, wm1d, bm1, wm2_row, bm2) = params
        H = w1.shape[1]
        merged = H + wd2.shape[0]
    HhP = merged - H
    weights = params

    # ---- batch tile selection ------------------------------------------------------
    tb = min(block_b, _round_up(B, 16))
    if B > 16:
        # keep >= 2 tiles so the "parallel" batch grid can use both v7x TensorCores
        tb = min(tb, _round_up(pl.cdiv(B, 2), 16))

    # cap tb so streamed blocks + activation slabs + resident weights fit the VMEM budget
    rdf_lanes = _round_up(rdf_size, 128)
    per_row = (2 * (rdf_lanes * x_rdf.dtype.itemsize + 128 * 4 + 128 * 4)  # dbl-buffered blocks
               + rdf_lanes * 2                                             # in-kernel bf16 copy
               + 6 * merged * 4)                                           # f32 activation slabs
    weight_bytes = sum(int(a.size) * jnp.dtype(a.dtype).itemsize for a in weights)
    tb_cap = (vmem_budget_bytes - 2 * weight_bytes - (2 << 20)) // per_row
    tb = max(16, min(tb, (tb_cap // 16) * 16))
    tb = _round_up(tb, 16)

    grid = pl.cdiv(B, tb)   # ragged last block: stale VMEM in OOB rows, output write masked

    def batch_spec(ncols):
        return pl.BlockSpec((tb, ncols), lambda i: (i, 0))

    def resident_spec(a):
        # Full-array block with constant index -> stays VMEM-resident across grid steps.
        return pl.BlockSpec(a.shape, lambda i: (0,) * a.ndim)

    in_specs = [batch_spec(rdf_size), batch_spec(1)] + [resident_spec(a) for a in weights]
    out_spec = pl.BlockSpec((tb, 1), lambda i: (i, 0))

    if fused:
        flops = 2 * B * (rdf_size * H + merged * merged + merged * H + HhP + H)
    else:
        flops = 2 * B * (rdf_size * H + H * H + HhP * HhP + H * H + HhP * H + HhP + H)
    bytes_accessed = (B * rdf_size * x_rdf.dtype.itemsize     # dominant x_rdf stream
                      + B * 4 + B * 4                         # x_density + output
                      + weight_bytes)

    kernel = _kernel_fused if fused else _kernel_split
    out = pl.pallas_call(
        kernel,
        out_shape=jax.ShapeDtypeStruct((B, 1), jnp.float32),
        grid=(grid,),
        in_specs=in_specs,
        out_specs=out_spec,
        compiler_params=pltpu.CompilerParams(
            dimension_semantics=("parallel",),        # batch tiles are independent
            vmem_limit_bytes=int(vmem_budget_bytes),  # < v7x's 64 MiB physical
        ),
        cost_estimate=pl.CostEstimate(
            flops=int(flops), transcendentals=0, bytes_accessed=int(bytes_accessed)),
    )(x_rdf, x_density, *weights)
    return out


# ----------------------------------------------------------------------------- params


def init_params(key, rdf_size, hidden_dim):
    """f32, torch-like init; weights stored as (in, out), biases as (1, out)."""
    Hh = hidden_dim // 2
    merged = hidden_dim + Hh
    ks = jax.random.split(key, 6)

    def lin(k, fan_in, fan_out):
        bound = float(fan_in) ** -0.5
        kw, kb = jax.random.split(k)
        w = jax.random.uniform(kw, (fan_in, fan_out), jnp.float32, -bound, bound)
        b = jax.random.uniform(kb, (1, fan_out), jnp.float32, -bound, bound)
        return w, b

    w1, b1 = lin(ks[0], rdf_size, hidden_dim)
    w2, b2 = lin(ks[1], hidden_dim, hidden_dim)
    wd1, bd1 = lin(ks[2], 1, Hh)
    wd2, bd2 = lin(ks[3], Hh, Hh)
    wm1, bm1 = lin(ks[4], merged, hidden_dim)
    wm2, bm2 = lin(ks[5], hidden_dim, 1)
    return dict(w1=w1, b1=b1, w2=w2, b2=b2, wd1=wd1, bd1=bd1, wd2=wd2, bd2=bd2,
                wm1=wm1, bm1=bm1, wm2=wm2, bm2=bm2)


def prepare_kernel_params(p, hidden_dim, compute_dtype=jnp.bfloat16, fuse_layer2=None):
    """Zero-pad the density branch to 128 lanes, optionally build the fused (v6e/v7x)
    block-diagonal layer-2 and K-concat merged-head weights, cast matmul weights."""
    if fuse_layer2 is None:
        fuse_layer2 = _default_fuse_layer2()
    H = hidden_dim
    Hh = H // 2
    HhP = _round_up(Hh, 128)
    pad = HhP - Hh
    cdt = compute_dtype

    wd1 = jnp.pad(p["wd1"], ((0, 0), (0, pad)))           # (1, HhP)  f32 (VPU affine)
    bd1 = jnp.pad(p["bd1"], ((0, 0), (0, pad)))
    wd2 = jnp.pad(p["wd2"], ((0, pad), (0, pad)))          # (HhP, HhP)
    bd2 = jnp.pad(p["bd2"], ((0, 0), (0, pad)))
    wm2_row = p["wm2"].T                                   # (1, H) for the lane reduction

    if fuse_layer2:
        zdt = p["w2"].dtype
        top = jnp.concatenate([p["w2"], jnp.zeros((H, HhP), zdt)], axis=1)
        bot = jnp.concatenate([jnp.zeros((HhP, H), zdt), wd2], axis=1)
        w2bd = jnp.concatenate([top, bot], axis=0)          # blockdiag(w2, wd2_pad): (H+HhP, H+HhP)
        b2bd = jnp.concatenate([p["b2"], bd2], axis=1)      # (1, H+HhP)
        wm1_full = jnp.concatenate(
            [p["wm1"][:H], jnp.pad(p["wm1"][H:], ((0, pad), (0, 0)))], axis=0)  # (H+HhP, H)
        return (p["w1"].astype(cdt), p["b1"],
                wd1, bd1,
                w2bd.astype(cdt), b2bd,
                wm1_full.astype(cdt), p["bm1"],
                wm2_row, p["bm2"])

    wm1r = p["wm1"][:H, :]
    wm1d = jnp.pad(p["wm1"][H:, :], ((0, pad), (0, 0)))
    return (p["w1"].astype(cdt), p["b1"],
            p["w2"].astype(cdt), p["b2"],
            wd1, bd1,
            wd2.astype(cdt), bd2,
            wm1r.astype(cdt), wm1d.astype(cdt), p["bm1"],
            wm2_row, p["bm2"])


def reference(x_rdf, x_density, p):
    """Pure-JAX f32 forward matching the PyTorch module semantics."""
    relu = lambda v: jnp.maximum(v, 0.0)
    h = relu(relu(x_rdf @ p["w1"] + p["b1"]) @ p["w2"] + p["b2"])
    d = relu(relu(x_density @ p["wd1"] + p["bd1"]) @ p["wd2"] + p["bd2"])
    merged = jnp.concatenate([h, d], axis=1)
    return relu(merged @ p["wm1"] + p["bm1"]) @ p["wm2"] + p["bm2"]


if __name__ == "__main__":
    # Small shapes consistent with the module (rdf bins + scalar density per sample).
    # B is NOT a multiple of the batch tile so the ragged-last-block path is exercised.
    B, RDF_SIZE, HIDDEN = 300, 256, 128
    key = jax.random.PRNGKey(0)
    kx, kd, kp = jax.random.split(key, 3)

    x_rdf = jax.random.normal(kx, (B, RDF_SIZE), jnp.float32)
    x_density = jax.random.normal(kd, (B, 1), jnp.float32)
    base = init_params(kp, RDF_SIZE, HIDDEN)
    ref = reference(x_rdf, x_density, base)

    # f32 paths: exact check of the forward semantics on both kernel variants.
    for fuse in (False, True):
        p_f32 = prepare_kernel_params(base, HIDDEN, compute_dtype=jnp.float32,
                                      fuse_layer2=fuse)
        out_f32 = jax.block_until_ready(rdf_density_mlp(x_rdf, x_density, p_f32))
        assert out_f32.shape == (B, 1)
        assert jnp.allclose(out_f32, ref, atol=2e-4, rtol=2e-4), f"f32 mismatch fused={fuse}"

    # bf16 matmul-operand path (production config) on this chip's default variant.
    p_bf16 = prepare_kernel_params(base, HIDDEN, compute_dtype=jnp.bfloat16)
    out_bf16 = jax.block_until_ready(rdf_density_mlp(x_rdf, x_density, p_bf16))
    assert out_bf16.shape == (B, 1)
    assert jnp.allclose(out_bf16, ref, atol=5e-2, rtol=5e-2), "bf16 mismatch"

    print("KERNEL_OK")
</pallas_src>

<mosaic_0001>
module attributes {stable_mosaic.version = 11 : i64} {
  func.func @_kernel_split(%arg0: i32, %arg1: memref<160x256xf32, #tpu.memory_space<vmem>>, %arg2: memref<160x1xf32, #tpu.memory_space<vmem>>, %arg3: memref<256x128xf32, #tpu.memory_space<vmem>>, %arg4: memref<1x128xf32, #tpu.memory_space<vmem>>, %arg5: memref<128x128xf32, #tpu.memory_space<vmem>>, %arg6: memref<1x128xf32, #tpu.memory_space<vmem>>, %arg7: memref<1x128xf32, #tpu.memory_space<vmem>>, %arg8: memref<1x128xf32, #tpu.memory_space<vmem>>, %arg9: memref<128x128xf32, #tpu.memory_space<vmem>>, %arg10: memref<1x128xf32, #tpu.memory_space<vmem>>, %arg11: memref<128x128xf32, #tpu.memory_space<vmem>>, %arg12: memref<128x128xf32, #tpu.memory_space<vmem>>, %arg13: memref<1x128xf32, #tpu.memory_space<vmem>>, %arg14: memref<1x128xf32, #tpu.memory_space<vmem>>, %arg15: memref<1x1xf32, #tpu.memory_space<vmem>>, %arg16: memref<160x1xf32, #tpu.memory_space<vmem>>) attributes {dimension_semantics = [#tpu.dimension_semantics<parallel>], iteration_bounds = array<i64: 2>, scalar_prefetch = 0 : i64, scratch_operands = 0 : i64, tpu.core_type = #tpu.core_type<tc>, window_params = [{transform_indices = @transform_0, window_bounds = array<i64: 160, 256>}, {transform_indices = @transform_1, window_bounds = array<i64: 160, 1>}, {pipeline_mode = #tpu.pipeline_mode<synchronous>, transform_indices = @transform_2, window_bounds = array<i64: 256, 128>}, {pipeline_mode = #tpu.pipeline_mode<synchronous>, transform_indices = @transform_3, window_bounds = array<i64: 1, 128>}, {pipeline_mode = #tpu.pipeline_mode<synchronous>, transform_indices = @transform_4, window_bounds = array<i64: 128, 128>}, {pipeline_mode = #tpu.pipeline_mode<synchronous>, transform_indices = @transform_5, window_bounds = array<i64: 1, 128>}, {pipeline_mode = #tpu.pipeline_mode<synchronous>, transform_indices = @transform_6, window_bounds = array<i64: 1, 128>}, {pipeline_mode = #tpu.pipeline_mode<synchronous>, transform_indices = @transform_7, window_bounds = array<i64: 1, 128>}, {pipeline_mode = #tpu.pipeline_mode<synchronous>, transform_indices = @transform_8, window_bounds = array<i64: 128, 128>}, {pipeline_mode = #tpu.pipeline_mode<synchronous>, transform_indices = @transform_9, window_bounds = array<i64: 1, 128>}, {pipeline_mode = #tpu.pipeline_mode<synchronous>, transform_indices = @transform_10, window_bounds = array<i64: 128, 128>}, {pipeline_mode = #tpu.pipeline_mode<synchronous>, transform_indices = @transform_11, window_bounds = array<i64: 128, 128>}, {pipeline_mode = #tpu.pipeline_mode<synchronous>, transform_indices = @transform_12, window_bounds = array<i64: 1, 128>}, {pipeline_mode = #tpu.pipeline_mode<synchronous>, transform_indices = @transform_13, window_bounds = array<i64: 1, 128>}, {pipeline_mode = #tpu.pipeline_mode<synchronous>, transform_indices = @transform_14, window_bounds = array<i64: 1, 1>}, {transform_indices = @transform_15, window_bounds = array<i64: 160, 1>}]} {
    %c0 = arith.constant 0 : index
    %c0_0 = arith.constant 0 : index
    %0 = vector.load %arg1[%c0, %c0_0] : memref<160x256xf32, #tpu.memory_space<vmem>>, vector<160x256xf32>
    %c0_1 = arith.constant 0 : index
    %c0_2 = arith.constant 0 : index
    %1 = vector.load %arg3[%c0_1, %c0_2] : memref<256x128xf32, #tpu.memory_space<vmem>>, vector<256x128xf32>
    %cst = arith.constant dense<0.000000e+00> : vector<160x128xf32>
    %2 = tpu.matmul %0, %1, %cst {dimension_numbers = #tpu.dot_dimension_numbers<[1], [0], [0], [1], [0, 0, 1, 1], [], []>} : vector<160x256xf32>, vector<256x128xf32>, vector<160x128xf32> -> vector<160x128xf32>
    %c0_3 = arith.constant 0 : index
    %c0_4 = arith.constant 0 : index
    %3 = vector.load %arg4[%c0_3, %c0_4] : memref<1x128xf32, #tpu.memory_space<vmem>>, vector<1x128xf32>
    %4 = vector.broadcast %3 : vector<1x128xf32> to vector<160x128xf32>
    %5 = arith.addf %2, %4 : vector<160x128xf32>
    %cst_5 = arith.constant 0.000000e+00 : f32
    %6 = vector.broadcast %cst_5 : f32 to vector<160x128xf32>
    %7 = arith.maximumf %5, %6 : vector<160x128xf32>
    %c0_6 = arith.constant 0 : index
    %c0_7 = arith.constant 0 : index
    %8 = vector.load %arg5[%c0_6, %c0_7] : memref<128x128xf32, #tpu.memory_space<vmem>>, vector<128x128xf32>
    %cst_8 = arith.constant dense<0.000000e+00> : vector<160x128xf32>
    %9 = tpu.matmul %7, %8, %cst_8 {dimension_numbers = #tpu.dot_dimension_numbers<[1], [0], [0], [1], [0, 0, 1, 1], [], []>} : vector<160x128xf32>, vector<128x128xf32>, vector<160x128xf32> -> vector<160x128xf32>
    %c0_9 = arith.constant 0 : index
    %c0_10 = arith.constant 0 : index
    %10 = vector.load %arg6[%c0_9, %c0_10] : memref<1x128xf32, #tpu.memory_space<vmem>>, vector<1x128xf32>
    %11 = vector.broadcast %10 : vector<1x128xf32> to vector<160x128xf32>
    %12 = arith.addf %9, %11 : vector<160x128xf32>
    %cst_11 = arith.constant 0.000000e+00 : f32
    %13 = vector.broadcast %cst_11 : f32 to vector<160x128xf32>
    %14 = arith.maximumf %12, %13 : vector<160x128xf32>
    %c0_12 = arith.constant 0 : index
    %c0_13 = arith.constant 0 : index
    %15 = vector.load %arg2[%c0_12, %c0_13] : memref<160x1xf32, #tpu.memory_space<vmem>>, vector<160x1xf32>
    %c0_14 = arith.constant 0 : index
    %c0_15 = arith.constant 0 : index
    %16 = vector.load %arg7[%c0_14, %c0_15] : memref<1x128xf32, #tpu.memory_space<vmem>>, vector<1x128xf32>
    %17 = vector.broadcast %15 : vector<160x1xf32> to vector<160x128xf32>
    %18 = vector.broadcast %16 : vector<1x128xf32> to vector<160x128xf32>
    %19 = arith.mulf %17, %18 : vector<160x128xf32>
    %c0_16 = arith.constant 0 : index
    %c0_17 = arith.constant 0 : index
    %20 = vector.load %arg8[%c0_16, %c0_17] : memref<1x128xf32, #tpu.memory_space<vmem>>, vector<1x128xf32>
    %21 = vector.broadcast %20 : vector<1x128xf32> to vector<160x128xf32>
    %22 = arith.addf %19, %21 : vector<160x128xf32>
    %cst_18 = arith.constant 0.000000e+00 : f32
    %23 = vector.broadcast %cst_18 : f32 to vector<160x128xf32>
    %24 = arith.maximumf %22, %23 : vector<160x128xf32>
    %c0_19 = arith.constant 0 : index
    %c0_20 = arith.constant 0 : index
    %25 = vector.load %arg9[%c0_19, %c0_20] : memref<128x128xf32, #tpu.memory_space<vmem>>, vector<128x128xf32>
    %cst_21 = arith.constant dense<0.000000e+00> : vector<160x128xf32>
    %26 = tpu.matmul %24, %25, %cst_21 {dimension_numbers = #tpu.dot_dimension_numbers<[1], [0], [0], [1], [0, 0, 1, 1], [], []>} : vector<160x128xf32>, vector<128x128xf32>, vector<160x128xf32> -> vector<160x128xf32>
    %c0_22 = arith.constant 0 : index
    %c0_23 = arith.constant 0 : index
    %27 = vector.load %arg10[%c0_22, %c0_23] : memref<1x128xf32, #tpu.memory_space<vmem>>, vector<1x128xf32>
    %28 = vector.broadcast %27 : vector<1x128xf32> to vector<160x128xf32>
    %29 = arith.addf %26, %28 : vector<160x128xf32>
    %cst_24 = arith.constant 0.000000e+00 : f32
    %30 = vector.broadcast %cst_24 : f32 to vector<160x128xf32>
    %31 = arith.maximumf %29, %30 : vector<160x128xf32>
    %c0_25 = arith.constant 0 : index
    %c0_26 = arith.constant 0 : index
    %32 = vector.load %arg11[%c0_25, %c0_26] : memref<128x128xf32, #tpu.memory_space<vmem>>, vector<128x128xf32>
    %cst_27 = arith.constant dense<0.000000e+00> : vector<160x128xf32>
    %33 = tpu.matmul %14, %32, %cst_27 {dimension_numbers = #tpu.dot_dimension_numbers<[1], [0], [0], [1], [0, 0, 1, 1], [], []>} : vector<160x128xf32>, vector<128x128xf32>, vector<160x128xf32> -> vector<160x128xf32>
    %c0_28 = arith.constant 0 : index
    %c0_29 = arith.constant 0 : index
    %34 = vector.load %arg12[%c0_28, %c0_29] : memref<128x128xf32, #tpu.memory_space<vmem>>, vector<128x128xf32>
    %cst_30 = arith.constant dense<0.000000e+00> : vector<160x128xf32>
    %35 = tpu.matmul %31, %34, %cst_30 {dimension_numbers = #tpu.dot_dimension_numbers<[1], [0], [0], [1], [0, 0, 1, 1], [], []>} : vector<160x128xf32>, vector<128x128xf32>, vector<160x128xf32> -> vector<160x128xf32>
    %36 = arith.addf %33, %35 : vector<160x128xf32>
    %c0_31 = arith.constant 0 : index
    %c0_32 = arith.constant 0 : index
    %37 = vector.load %arg13[%c0_31, %c0_32] : memref<1x128xf32, #tpu.memory_space<vmem>>, vector<1x128xf32>
    %38 = vector.broadcast %37 : vector<1x128xf32> to vector<160x128xf32>
    %39 = arith.addf %36, %38 : vector<160x128xf32>
    %cst_33 = arith.constant 0.000000e+00 : f32
    %40 = vector.broadcast %cst_33 : f32 to vector<160x128xf32>
    %41 = arith.maximumf %39, %40 : vector<160x128xf32>
    %c0_34 = arith.constant 0 : index
    %c0_35 = arith.constant 0 : index
    %42 = vector.load %arg14[%c0_34, %c0_35] : memref<1x128xf32, #tpu.memory_space<vmem>>, vector<1x128xf32>
    %43 = vector.broadcast %42 : vector<1x128xf32> to vector<160x128xf32>
    %44 = arith.mulf %41, %43 : vector<160x128xf32>
    %cst_36 = arith.constant dense<0.000000e+00> : vector<160xf32>
    %45 = vector.multi_reduction <add>, %44, %cst_36 [1] : vector<160x128xf32> to vector<160xf32>
    %46 = vector.shape_cast %45 : vector<160xf32> to vector<160x1xf32>
    %c0_37 = arith.constant 0 : index
    %c0_38 = arith.constant 0 : index
    %47 = vector.load %arg15[%c0_37, %c0_38] : memref<1x1xf32, #tpu.memory_space<vmem>>, vector<1x1xf32>
    %48 = vector.broadcast %47 : vector<1x1xf32> to vector<160x1xf32>
    %49 = arith.addf %46, %48 : vector<160x1xf32>
    %c0_39 = arith.constant 0 : index
    %c0_40 = arith.constant 0 : index
    %50 = vector.load %arg16[%c0_39, %c0_40] : memref<160x1xf32, #tpu.memory_space<vmem>>, vector<160x1xf32>
    tpu.vector_store %arg16[%c0_39, %c0_40], %49 {strides = array<i32>} : memref<160x1xf32, #tpu.memory_space<vmem>>, vector<160x1xf32>,
    return
  }
  func.func @transform_0(%arg0: i32) -> (i32, i32) {
    %c0_i32 = arith.constant 0 : i32
    %c0_i32_0 = arith.constant 0 : i32
    return %arg0, %c0_i32 : i32, i32
  }
  func.func @transform_1(%arg0: i32) -> (i32, i32) {
    %c0_i32 = arith.constant 0 : i32
    %c0_i32_0 = arith.constant 0 : i32
    return %arg0, %c0_i32 : i32, i32
  }
  func.func @transform_2(%arg0: i32) -> (i32, i32) {
    %c0_i32 = arith.constant 0 : i32
    %c0_i32_0 = arith.constant 0 : i32
    %c0_i32_1 = arith.constant 0 : i32
    return %c0_i32, %c0_i32_0 : i32, i32
  }
  func.func @transform_3(%arg0: i32) -> (i32, i32) {
    %c0_i32 = arith.constant 0 : i32
    %c0_i32_0 = arith.constant 0 : i32
    %c0_i32_1 = arith.constant 0 : i32
    return %c0_i32, %c0_i32_0 : i32, i32
  }
  func.func @transform_4(%arg0: i32) -> (i32, i32) {
    %c0_i32 = arith.constant 0 : i32
    %c0_i32_0 = arith.constant 0 : i32
    %c0_i32_1 = arith.constant 0 : i32
    return %c0_i32, %c0_i32_0 : i32, i32
  }
  func.func @transform_5(%arg0: i32) -> (i32, i32) {
    %c0_i32 = arith.constant 0 : i32
    %c0_i32_0 = arith.constant 0 : i32
    %c0_i32_1 = arith.constant 0 : i32
    return %c0_i32, %c0_i32_0 : i32, i32
  }
  func.func @transform_6(%arg0: i32) -> (i32, i32) {
    %c0_i32 = arith.constant 0 : i32
    %c0_i32_0 = arith.constant 0 : i32
    %c0_i32_1 = arith.constant 0 : i32
    return %c0_i32, %c0_i32_0 : i32, i32
  }
  func.func @transform_7(%arg0: i32) -> (i32, i32) {
    %c0_i32 = arith.constant 0 : i32
    %c0_i32_0 = arith.constant 0 : i32
    %c0_i32_1 = arith.constant 0 : i32
    return %c0_i32, %c0_i32_0 : i32, i32
  }
  func.func @transform_8(%arg0: i32) -> (i32, i32) {
    %c0_i32 = arith.constant 0 : i32
    %c0_i32_0 = arith.constant 0 : i32
    %c0_i32_1 = arith.constant 0 : i32
    return %c0_i32, %c0_i32_0 : i32, i32
  }
  func.func @transform_9(%arg0: i32) -> (i32, i32) {
    %c0_i32 = arith.constant 0 : i32
    %c0_i32_0 = arith.constant 0 : i32
    %c0_i32_1 = arith.constant 0 : i32
    return %c0_i32, %c0_i32_0 : i32, i32
  }
  func.func @transform_10(%arg0: i32) -> (i32, i32) {
    %c0_i32 = arith.constant 0 : i32
    %c0_i32_0 = arith.constant 0 : i32
    %c0_i32_1 = arith.constant 0 : i32
    return %c0_i32, %c0_i32_0 : i32, i32
  }
  func.func @transform_11(%arg0: i32) -> (i32, i32) {
    %c0_i32 = arith.constant 0 : i32
    %c0_i32_0 = arith.constant 0 : i32
    %c0_i32_1 = arith.constant 0 : i32
    return %c0_i32, %c0_i32_0 : i32, i32
  }
  func.func @transform_12(%arg0: i32) -> (i32, i32) {
    %c0_i32 = arith.constant 0 : i32
    %c0_i32_0 = arith.constant 0 : i32
    %c0_i32_1 = arith.constant 0 : i32
    return %c0_i32, %c0_i32_0 : i32, i32
  }
  func.func @transform_13(%arg0: i32) -> (i32, i32) {
    %c0_i32 = arith.constant 0 : i32
    %c0_i32_0 = arith.constant 0 : i32
    %c0_i32_1 = arith.constant 0 : i32
    return %c0_i32, %c0_i32_0 : i32, i32
  }
  func.func @transform_14(%arg0: i32) -> (i32, i32) {
    %c0_i32 = arith.constant 0 : i32
    %c0_i32_0 = arith.constant 0 : i32
    %c0_i32_1 = arith.constant 0 : i32
    return %c0_i32, %c0_i32_0 : i32, i32
  }
  func.func @transform_15(%arg0: i32) -> (i32, i32) {
    %c0_i32 = arith.constant 0 : i32
    %c0_i32_0 = arith.constant 0 : i32
    return %arg0, %c0_i32 : i32, i32
  }
}

</mosaic_0001>

<bundles_post_ra>
// kernel: tpu_custom_call.1
= control target key start
LH: loop header
LB: loop body
LE: loop exit
PB: predicated region body
PF: predicated region fallthrough
CT: control target
= control target key end

     0   :  { %s4155_s0 = inlined_call_operand.hbm [shape: f32[300,256], index: 0, kind: input, shape index: {}]   ;;  %s4156_s1 = inlined_call_operand.vmem [shape: f32[300,1], index: 1, kind: input, shape index: {}]   ;;  %s4157_s2 = inlined_call_operand.vmem [shape: f32[256,128], index: 2, kind: input, shape index: {}]   ;;  %s4158_s3 = inlined_call_operand.vmem [shape: f32[1,128], index: 3, kind: input, shape index: {}]   ;;  %s4159_s4 = inlined_call_operand.hbm [shape: f32[128,128], index: 4, kind: input, shape index: {}]   ;;  %s4160_s5 = inlined_call_operand.vmem [shape: f32[1,128], index: 5, kind: input, shape index: {}]   ;;  %s4161_s6 = inlined_call_operand.vmem [shape: f32[1,128], index: 6, kind: input, shape index: {}]   ;;  %s4162_s7 = inlined_call_operand.vmem [shape: f32[1,128], index: 7, kind: input, shape index: {}]   ;;  %s4163_s8 = inlined_call_operand.hbm [shape: f32[128,128], index: 8, kind: input, shape index: {}]   ;;  %s4164_s9 = inlined_call_operand.vmem [shape: f32[1,128], index: 9, kind: input, shape index: {}]   ;;  %s4165_s10 = inlined_call_operand.hbm [shape: f32[128,128], index: 10, kind: input, shape index: {}]   ;;  %s4166_s11 = inlined_call_operand.hbm [shape: f32[128,128], index: 11, kind: input, shape index: {}]   ;;  %s4167_s12 = inlined_call_operand.vmem [shape: f32[1,128], index: 12, kind: input, shape index: {}]   ;;  %s4168_s13 = inlined_call_operand.vmem [shape: f32[1,128], index: 13, kind: input, shape index: {}]   ;;  %s4169_s14 = inlined_call_operand.<no memory space> [shape: f32[1,1], index: 14, kind: input, shape index: {}]   ;;  %s4170_s15 = inlined_call_operand.vmem [shape: f32[300,1], index: 15, kind: output, shape index: {}]  }
   0x1   :  { %4175 = sst [smem:[#allocation18_spill]] %s4155_s0  ;;  %v20_v0 = vstv %s4169_s14 }
   0x2   :  { %4176 = sst [smem:[#allocation19_spill]] %s4168_s13  ;;  %21 = vst [vmem:[#allocation2] sm:$0x1] %v20_v0 }
   0x3   :  { %4177 = sst [smem:[#allocation20_spill]] %s4170_s15 }
   0x4   :  { %22 = vsyncpa [#allocation4], 0 }
   0x5   :  { %24 = vsyncpa [#allocation4 + $0x1], 0 }
   0x6   :  { %25 = vsyncpa [#allocation6], 0 }
   0x7   :  { %26 = vsyncpa [#allocation9], 0  ;;  %s3338_s20 = smov 0   ;;  %s3340_s21 = smov 0  }
   0x8   :  { %s3342_s22 = smov 0   ;;  %s3344_s23 = smov 0  }
   0x9 LB: > { %s3357_s14 = sadd.s32 4294967295, %s3210_s23   ;;  %s3360_s24 = sadd.s32 1, %s3210_s23   ;;  %s3210_s23 = sphi %s3344_s23, %s4198_s23   ;;  %s3206_s22 = sphi %s3342_s22, %s4202_s22   ;;  %s3202_s21 = sphi %s3340_s21, %s4201_s21   ;;  %s3198_s20 = sphi %s3338_s20, %s4200_s20  }
   0xa   : > { %4178 = sst [smem:[#allocation15_spill]] %s3360_s24  ;;  %s36_s25 = ssub.s32 %s3210_s23, %s3360_s24 }
   0xb   : > { %s39_s26 = sadd.s32 1, %s3206_s22  ;;  %p37_p0 = scmp.eq.s32.totalorder %s36_s25, 0 }
   0xc   : > { %p46_p1 = scmp.ne.s32.totalorder %s3206_s22, %s3202_s21  ;;  %p47_p2 = scmp.eq.s32.totalorder %s3210_s23, 0 }
   0xd   : > { %p52_p3 = scmp.ne.s32.totalorder %s3202_s21, %s3198_s20  ;;  %p4174_p5 = scmp.eq.s32.totalorder %s3357_s14, 0 }
   0xe   : > { %s3370_s27 = scalar_select %p37_p0, %s3206_s22, %s39_s26  }
   0xf   : > { %p3372_p4 = por %p47_p2, %p46_p1  ;;  %p375_p6 = scmp.eq.s32.totalorder %s3357_s14, 1 }
  0x10   : > { %4179 = sst [smem:[#allocation16_spill]] %s3370_s27  ;;  %p2384_p7 = scmp.ge.s32.totalorder %s3210_s23, 1 }
  0x11   : > { %p3381_p8 = por %p4174_p5, %p52_p3  ;;  %p388_p9 = scmp.lt.s32.totalorder %s3210_s23, 3 }
  0x12   : > { %p3386_p10 = por %p375_p6, %p46_p1  ;;  %s3244_s17 = smov [#allocation5]  }
  0x13   : > { %p3390_p11 = pnand %p2384_p7, %p388_p9  ;;  %s406_s18 = sshll.u32 %s3244_s17, 4  ;;  %s407_s18 = int_to_ptr.vmem [resolvable:$true] %s406_s18 }
  0x14   : > { %s4182_s30 = scalar_select %p3386_p10, 1, 0 }
  0x15   : > { %p2872_p12 = pneg %p3390_p11  ;;  %s3245_s20 = smov [#allocation8]  }
  0x16   : > { %4183 = sst [smem:[#allocation17_spill]] %s4182_s30  ;;  %s444_s25 = sshll.u32 %s3245_s20, 4  ;;  %s445_s25 = int_to_ptr.vmem [resolvable:$true] %s444_s25 }
  0x17   : > { %p3398_p13 = pnand %p2872_p12, %p4174_p5  ;;  %s3246_s26 = smov [#allocation7]  }
  0x18   : > { %s428_s27 = sshll.u32 %s3246_s26, 4  ;;  %s3017_s24 = scalar_lea.vmem %s407_s18, 2048  ;;  %s429_s27 = int_to_ptr.vmem [resolvable:$true] %s428_s27 }
  0x19   : > { %p3008_p0 = pneg %p3398_p13  ;;  %p3018_p1 = scmp.ne.s32.totalorder %s407_s18, %s3017_s24 }
  0x1a   : > { %p3025_p6 = scmp.lt.s32.totalorder %s407_s18, %s407_s18  ;;  %p3026_p7 = scmp.lt.s32.totalorder %s3017_s24, %s3017_s24 }
  0x1b   : > { %p3020_p2 = pnand %p3018_p1, %p3008_p0 }
  0x1c   : > { %p3027_p9 = por %p3026_p7, %p3025_p6 }
  0x1d   : > { %p3021_p3 = pneg %p3020_p2 }
  0x1f   : > { %p3028_p12 = pnand %p3027_p9, %p3021_p3 }
  0x21   : > { %3031 = shalt.err (!%p3028_p12)
}
  0x22   : > { %s3247_s17 = smov 128   ;;  %s3248_s20 = smov 8  }
  0x23   : > { %2875 = dma.hbm_to_vmem [thread:$0]  (!%p3398_p13), %s4159_s4, 2048, %s407_s18, [#allocation6], %s3247_s17, %s3247_s17, %s3248_s20  }
  0x24   : > { %s3043_s30 = scalar_lea.vmem %s445_s25, 2048  ;;  %p3051_p3 = scmp.lt.s32.totalorder %s445_s25, %s445_s25 }
  0x25   : > { %p3044_p1 = scmp.ne.s32.totalorder %s445_s25, %s3043_s30  ;;  %p3052_p7 = scmp.lt.s32.totalorder %s3043_s30, %s3043_s30 }
  0x27   : > { %p3046_p2 = pnand %p3044_p1, %p3008_p0  ;;  %p3053_p9 = por %p3052_p7, %p3051_p3 }
  0x29   : > { %p3047_p6 = pneg %p3046_p2 }
  0x2b   : > { %p3054_p12 = pnand %p3053_p9, %p3047_p6 }
  0x2d   : > { %3057 = shalt.err (!%p3054_p12)
}
  0x2e   : > { %2881 = dma.hbm_to_vmem [thread:$0]  (!%p3398_p13), %s4165_s10, 2048, %s445_s25, [#allocation9], %s3247_s17, %s3247_s17, %s3248_s20  }
  0x2f   : > { %s3069_s15 = scalar_lea.vmem %s429_s27, 2048  ;;  %p3077_p3 = scmp.lt.s32.totalorder %s429_s27, %s429_s27 }
  0x30   : > { %p3070_p5 = scmp.ne.s32.totalorder %s429_s27, %s3069_s15  ;;  %p3078_p6 = scmp.lt.s32.totalorder %s3069_s15, %s3069_s15 }
  0x32   : > { %p3072_p1 = pnand %p3070_p5, %p3008_p0  ;;  %p3079_p7 = por %p3078_p6, %p3077_p3 }
  0x34   : > { %p3073_p2 = pneg %p3072_p1 }
  0x36   : > { %p3080_p9 = pnand %p3079_p7, %p3073_p2 }
  0x38   : > { %3083 = shalt.err (!%p3080_p9)
}
  0x39   : > { %2878 = dma.hbm_to_vmem [thread:$0]  (!%p3398_p13), %s4163_s8, 2048, %s429_s27, [#allocation6], %s3247_s17, %s3247_s17, %s3248_s20  }
  0x3a   : > { %s3249_s18 = smov [#allocation10]  }
  0x3b   : > { %s457_s25 = sshll.u32 %s3249_s18, 4  ;;  %s458_s25 = int_to_ptr.vmem [resolvable:$true] %s457_s25 }
  0x3c   : > { %s3095_s26 = scalar_lea.vmem %s458_s25, 2048  ;;  %p3103_p2 = scmp.lt.s32.totalorder %s458_s25, %s458_s25 }
  0x3d   : > { %p3096_p5 = scmp.ne.s32.totalorder %s458_s25, %s3095_s26  ;;  %p3104_p3 = scmp.lt.s32.totalorder %s3095_s26, %s3095_s26 }
  0x3f   : > { %p3098_p12 = pnand %p3096_p5, %p3008_p0  ;;  %p3105_p6 = por %p3104_p3, %p3103_p2 }
  0x41   : > { %p3099_p1 = pneg %p3098_p12 }
  0x43   : > { %p3106_p7 = pnand %p3105_p6, %p3099_p1 }
  0x45   : > { %3109 = shalt.err (!%p3106_p7)
}
  0x46   : > { %2884 = dma.hbm_to_vmem [thread:$0]  (!%p3398_p13), %s4166_s11, 2048, %s458_s25, [#allocation9], %s3247_s17, %s3247_s17, %s3248_s20  }
  0x47   : > { %p2389_p9 = scmp.ge.s32.totalorder %s3210_s23, 2 }
  0x49   : > { %476 = sbr.rel (%p2389_p9) target bundleno = 117 (0x75), region = 68 }
  0x4e   : > { %479 = sbr.rel (!%p3372_p4) target bundleno = 117 (0x75), region = 72  ;;  %s480_s15 = sand.u32 (%p3372_p4), 1, %s3206_s22  }
  0x4f   : > { %s485_s13 = smul.u32 (%p3372_p4), 20, %s3210_s23  ;;  %s3456_s27 = scalar_lea.sflag (%p3372_p4), [#allocation4], %s480_s15 }
  0x50   : > { %s2852_s30 = smul.u32 (%p3372_p4), 320, %s480_s15 }
  0x51   : > { %s486_s18 = ssub.s32 (%p3372_p4), 38, %s485_s13 }
  0x52   : > { %p487_p0 = scmp.lt.s32.totalorder (%p3372_p4), %s486_s18, 20  ;;  %s484_s17 = scalar_lea.vmem (%p3372_p4), [#allocation3], %s2852_s30 }
  0x54   : > { %s4204_s18 = smov (!%p487_p0, %s486_s18), 20 }
  0x55   : > { %s3453_s19 = sshll.u32 %s4204_s18, 8 }
  0x56   : > { %s492_s26 = ssub.s32 5120, %s3453_s19 }
  0x57   : > { %493 = vsyncadd %s3456_s27, %s492_s26  ;;  %p2392_p4 = scmp.ne.s32.totalorder %s3453_s19, 0  ;;  %s2427_s28 = smul.u32 5120, %s3210_s23 }
  0x58   : > { %s499_s20 = sshll.u32 %s484_s17, 4  ;;  %s4186_s0 = sld [smem:[#allocation18_spill]]  ;;  %s3466_s20 = int_to_ptr.vmem [resolvable:$true] %s499_s20 }
  0x5e   : > { %s3464_s13 = scalar_lea.hbm %s4186_s0, %s2427_s28  ;;  %s3114_s23 = scalar_lea.hbm %s4186_s0, 9728 }
  0x5f   : > { %s3110_s15 = scalar_lea.hbm %s3464_s13, %s3453_s19  ;;  %p3115_p1 = scmp.lt.s32.totalorder %s3464_s13, %s4186_s0 }
  0x60   : > { %p3111_p13 = scmp.ne.s32.totalorder %s3464_s13, %s3110_s15  ;;  %p3116_p2 = scmp.lt.s32.totalorder %s3114_s23, %s3110_s15 }
  0x62   : > { %p3112_p5 = pnand %p3111_p13, %p2392_p4  ;;  %p3117_p3 = por %p3116_p2, %p3115_p1 }
  0x64   : > { %p3113_p12 = pneg %p3112_p5 }
  0x66   : > { %p3118_p6 = pnand %p3117_p3, %p3113_p12 }
  0x68   : > { %3121 = shalt.err (!%p3118_p6)
}
  0x69   : > { %s3122_s28 = scalar_lea.vmem %s3466_s20, %s3453_s19  ;;  %s3250_s25 = smov [#allocation3]  }
  0x6a   : > { %p3123_p7 = scmp.ne.s32.totalorder %s3466_s20, %s3122_s28  ;;  %s3126_s24 = sshll.u32 %s3250_s25, 4  ;;  %s3127_s24 = int_to_ptr.vmem [resolvable:$false] %s3126_s24 }
  0x6b   : > { %s3128_s30 = scalar_lea.vmem %s3127_s24, 10240  ;;  %p3129_p13 = scmp.lt.s32.totalorder %s3466_s20, %s3127_s24 }
  0x6c   : > { %p3124_p9 = pnand %p3123_p7, %p2392_p4  ;;  %p3130_p5 = scmp.lt.s32.totalorder %s3128_s30, %s3122_s28 }
  0x6e   : > { %p3125_p0 = pneg %p3124_p9  ;;  %p3131_p10 = por %p3130_p5, %p3129_p13 }
  0x70   : > { %p3132_p1 = pnand %p3131_p10, %p3125_p0 }
  0x72   : > { %3135 = shalt.err (!%p3132_p1)
}
  0x73   : > { %s3251_s15 = smov 256   ;;  %s3252_s18 = smov 16  }
  0x74   : > { %505 = dma.hbm_to_vmem [thread:$0]  (%p2392_p4), %s3464_s13, %s3453_s19, %s3466_s20, %s3456_s27, %s3251_s15, %s3251_s15, %s3252_s18  }
  0x75 PF: > { %528 = sbr.rel (%p3390_p11) target bundleno = 1123 (0x463), region = 80  ;;  %s3495_s23 = sand.u32 (!%p3390_p11), 1, %s3202_s21  }
  0x76   : > { %s2853_s26 = smul.u32 (!%p3390_p11), 320, %s3495_s23  ;;  %s531_s17 = scalar_lea.sflag (!%p3390_p11), [#allocation4], %s3495_s23 }
  0x78   : > { %s3499_s28 = scalar_lea.vmem (!%p3390_p11), [#allocation3], %s2853_s26 }
  0x7a   : > { %3185 = dma.done.wait (%p3381_p8), %s531_s17, 5120  }
  0x7b   : > { %3187 = vsyncadd (%p3381_p8), %s531_s17, 4294962176  ;;  %p4187_p10 = scmp.eq.s32.totalorder %s3357_s14, 0 }
  0x7d   : > { %3189 = dma.done.wait (%p4187_p10), [#allocation6], 4096   ;;  %p4188_p11 = pmov %p4187_p10 }
  0x7e   : > { %p4189_p4 = pmov %p4187_p10 }
  0x7f   : > { %3191 = vsyncadd (%p4188_p11), [#allocation6], 4294963200 }
  0x80   : > { %3193 = dma.done.wait (%p4189_p4), [#allocation9], 4096   ;;  %p4190_p12 = pmov %p4189_p4 }
  0x81   : > { %v3253_v1 = vmov 0.0   ;;  %v685_v2 = vld [vmem:[%s4157_s2 + $0x78] sm:$0xff]  ;;  %v684_v3 = vld [vmem:[%s4157_s2 + $0x70] sm:$0xff]  ;;  %v683_v4 = vld [vmem:[%s4157_s2 + $0x68] sm:$0xff]  ;;  %s3546_s27 = smul.u32 20, %s3357_s14  ;;  %v3254_v11 = vmov 0  }
  0x82   : > { %3195 = vsyncadd (%p4190_p12), [#allocation9], 4294963200  ;;  %709 = vmatprep.subr.mxu0 %v3253_v1  ;;  %v682_v5 = vld [vmem:[%s4157_s2 + $0x60] sm:$0xff]  ;;  %v681_v6 = vld [vmem:[%s4157_s2 + $0x58] sm:$0xff]  ;;  %3000 = vset.pattern.permute.xlu0 %v3254_v11  ;;  %s2854_s17 = smul.u32 160, %s3495_s23  ;;  %vm2007_vm0 = vcmask 7168  }
  0x83   : > { %710 = vmatpush1.msra.mxu0 %v685_v2  ;;  %v680_v7 = vld [vmem:[%s4157_s2 + $0x50] sm:$0xff]  ;;  %v679_v8 = vld [vmem:[%s4157_s2 + $0x48] sm:$0xff]  ;;  %v678_v10 = vld [vmem:[%s4157_s2 + $0x40] sm:$0xff]  ;;  %p616_p8 = scmp.lt.s32.totalorder %s3546_s27, 37  ;;  %3001 = vset.pattern.permute.xlu1 %v3254_v11  ;;  %s4192_s23 = sld [smem:[#allocation17_spill]] }
  0x84   : > { %711 = vmatprep.subr.mxu0 %v3253_v1  ;;  %v631_v9 = vld [vmem:[%s3499_s28 + $0x8] sm:$0xff]  ;;  %v677_v12 = vld [vmem:[%s4157_s2 + $0x38] sm:$0xff]  ;;  %v674_v15 = vld [vmem:[%s4157_s2 + $0x20] sm:$0xff]  ;;  %s4007_s16 = scalar_lea.vmem [#allocation11], %s2854_s17  }
  0x85   : > { %712 = vmatpush1.msra.mxu0 %v684_v3  ;;  %773 = vmatprep.mubr.f32.mxu0 %v631_v9  ;;  %v676_v13 = vld [vmem:[%s4157_s2 + $0x30] sm:$0xff]  ;;  %s617_s30 = scalar_select %p616_p8, %s3546_s27, 37  ;;  %v675_v14 = vld [vmem:[%s4157_s2 + $0x28] sm:$0xff]  ;;  %v673_v16 = vld [vmem:[%s4157_s2 + $0x18] sm:$0xff] }
  0x86   : > { %713 = vmatprep.subr.mxu0 %v3253_v1  ;;  %v672_v17 = vld [vmem:[%s4157_s2 + $0x10] sm:$0xff]  ;;  %v671_v20 = vld [vmem:[%s4157_s2 + $0x8] sm:$0xff]  ;;  %v670_v23 = vld [vmem:[%s4157_s2] sm:$0xff] }
  0x87   : > { %714 = vmatpush1.msra.mxu0 %v683_v4  ;;  %s2402_s26 = sshll.u32 %s617_s30, 3  ;;  %v701_v24 = vld [vmem:[%s4157_s2 + $0xf8] sm:$0xff]  ;;  %v700_v28 = vld [vmem:[%s4157_s2 + $0xf0] sm:$0xff]  ;;  %v699_v30 = vld [vmem:[%s4157_s2 + $0xe8] sm:$0xff] }
  0x88   : > { %715 = vmatprep.subr.mxu0 %v3253_v1  ;;  %s3569_s20 = scalar_lea.vmem %s4156_s1, %s2402_s26  ;;  %v909_v26 = vld [vmem:[#allocation5 + $0x78] sm:$0xff]  ;;  %v908_v29 = vld [vmem:[#allocation5 + $0x70] sm:$0xff]  ;;  %v907_v34 = vld [vmem:[#allocation5 + $0x68] sm:$0xff] }
  0x89   : > { %716 = vmatpush1.msra.mxu0 %v682_v5  ;;  %v1102_v18 = vld [vmem:[%s3569_s20] sm:$0xff]  ;;  %v1104_v19 = vld [vmem:[%s3569_s20 + $0x10] sm:$0xff]  ;;  %v1103_v21 = vld [vmem:[%s3569_s20 + $0x8] sm:$0xff]  ;;  %2572 = vmatprep.subr.mxu1 %v909_v26  ;;  %p4193_p2 = scmp.ne.s32.totalorder %s4192_s23, 0 }
  0x8a   : > { %717 = vmatprep.subr.mxu0 %v3253_v1  ;;  %1125 = vperm.xlu0 %3000, %v1102_v18   ;;  %v1105_v22 = vld [vmem:[%s3569_s20 + $0x18] sm:$0xff]  ;;  %v1106_v25 = vld [vmem:[%s3569_s20 + $0x20] sm:$0xff]  ;;  %v1107_v27 = vld [vmem:[%s3569_s20 + $0x28] sm:$0xff]  ;;  %s2036_s19 = ssub.s32 (%p4193_p2), 38, %s3546_s27  ;;  %s2426_s29 = smul.u32 (%p4193_p2), 160, %s3357_s14 }
  0x8b   : > { %718 = vmatpush1.msra.mxu0 %v681_v6  ;;  %1135 = vperm.xlu1 %3001, %v1104_v19   ;;  %v1108_v31 = vld [vmem:[%s3569_s20 + $0x30] sm:$0xff]  ;;  %v1109_v32 = vld [vmem:[%s3569_s20 + $0x38] sm:$0xff]  ;;  %v698_v33 = vld [vmem:[%s4157_s2 + $0xe0] sm:$0xff]  ;;  %p2037_p3 = scmp.lt.s32.totalorder (%p4193_p2), %s2036_s19, 20  ;;  %s4194_s24 = sld [smem:[#allocation20_spill]] (%p4193_p2) }
  0x8c   : > { %719 = vmatprep.subr.mxu0 %v3253_v1  ;;  %2573 = vmatpush3.msra.mxu1 %v909_v26  ;;  %v697_v35 = vld [vmem:[%s4157_s2 + $0xd8] sm:$0xff]  ;;  %v1110_v36 = vld [vmem:[%s3569_s20 + $0x40] sm:$0xff]  ;;  %v1111_v37 = vld [vmem:[%s3569_s20 + $0x48] sm:$0xff] }
  0x8d   : > { %720 = vmatpush1.msra.mxu0 %v680_v7  ;;  %2574 = vmatprep.subr.mxu1 %v908_v29  ;;  %v696_v38 = vld [vmem:[%s4157_s2 + $0xd0] sm:$0xff]  ;;  %v906_v39 = vld [vmem:[#allocation5 + $0x60] sm:$0xff]  ;;  %v1113_v42 = vld [vmem:[%s3569_s20 + $0x58] sm:$0xff] }
  0x8e   : > { %721 = vmatprep.subr.mxu0 %v3253_v1  ;;  %1130 = vperm.xlu0 %3000, %v1103_v21   ;;  %v695_v40 = vld [vmem:[%s4157_s2 + $0xc8] sm:$0xff]  ;;  %v1112_v41 = vld [vmem:[%s3569_s20 + $0x50] sm:$0xff]  ;;  %v694_v43 = vld [vmem:[%s4157_s2 + $0xc0] sm:$0xff] }
  0x8f   : > { %722 = vmatpush1.msra.mxu0 %v679_v8  ;;  %1140 = vperm.xlu1 %3001, %v1105_v22   ;;  %v905_v44 = vld [vmem:[#allocation5 + $0x58] sm:$0xff]  ;;  %v1115_v47 = vld [vmem:[%s3569_s20 + $0x68] sm:$0xff]  ;;  %v692_v48 = vld [vmem:[%s4157_s2 + $0xb0] sm:$0xff] }
  0x90   : > { %723 = vmatprep.subr.mxu0 %v3253_v1  ;;  %2575 = vmatpush3.msra.mxu1 %v908_v29  ;;  %v693_v45 = vld [vmem:[%s4157_s2 + $0xb8] sm:$0xff]  ;;  %v1114_v46 = vld [vmem:[%s3569_s20 + $0x60] sm:$0xff]  ;;  %v691_v50 = vld [vmem:[%s4157_s2 + $0xa8] sm:$0xff] }
  0x91   : > { %724 = vmatpush1.msra.mxu0 %v678_v10  ;;  %2576 = vmatprep.subr.mxu1 %v907_v34  ;;  %v904_v49 = vld [vmem:[#allocation5 + $0x50] sm:$0xff]  ;;  %v690_v53 = vld [vmem:[%s4157_s2 + $0xa0] sm:$0xff]  ;;  %v903_v54 = vld [vmem:[#allocation5 + $0x48] sm:$0xff]  ;;  %s4056_s30 = scalar_lea.vmem (%p4193_p2), %s4194_s24, %s2426_s29  }
  0x92   : > { %725 = vmatprep.subr.mxu0 %v3253_v1  ;;  %1145 = vperm.xlu0 %3000, %v1106_v25   ;;  %v1116_v51 = vld [vmem:[%s3569_s20 + $0x70] sm:$0xff]  ;;  %v1117_v52 = vld [vmem:[%s3569_s20 + $0x78] sm:$0xff]  ;;  %v1118_v56 = vld [vmem:[%s3569_s20 + $0x80] sm:$0xff] }
  0x93   : > { %726 = vmatpush1.msra.mxu0 %v677_v12  ;;  %1150 = vperm.xlu1 %3001, %v1107_v27   ;;  %v689_v55 = vld [vmem:[%s4157_s2 + $0x98] sm:$0xff]  ;;  %v1119_v57 = vld [vmem:[%s3569_s20 + $0x88] sm:$0xff]  ;;  %v688_v58 = vld [vmem:[%s4157_s2 + $0x90] sm:$0xff] }
  0x94   : > { %727 = vmatprep.subr.mxu0 %v3253_v1  ;;  %2577 = vmatpush3.msra.mxu1 %v907_v34  ;;  %v902_v59 = vld [vmem:[#allocation5 + $0x40] sm:$0xff]  ;;  %v1120_v61 = vld [vmem:[%s3569_s20 + $0x90] sm:$0xff]  ;;  %v1121_v62 = vld [vmem:[%s3569_s20 + $0x98] sm:$0xff]  ;;  %s4191_s20 = sld [smem:[#allocation19_spill]] }
  0x95   : > { %728 = vmatpush1.msra.mxu0 %v676_v13  ;;  %2578 = vmatprep.subr.mxu1 %v906_v39  ;;  %v687_v60 = vld [vmem:[%s4157_s2 + $0x88] sm:$0xff]  ;;  %v686_v63 = vld [vmem:[%s4157_s2 + $0x80] sm:$0xff]  ;;  %v900_v4 = vld [vmem:[#allocation5 + $0x30] sm:$0xff] }
  0x96   : > { %729 = vmatprep.subr.mxu0 %v3253_v1  ;;  %1155 = vperm.xlu0 %3000, %v1108_v31   ;;  %v901_v0 = vld [vmem:[#allocation5 + $0x38] sm:$0xff]  ;;  %v630_v2 = vld [vmem:[%s3499_s28] sm:$0xff]  ;;  %v899_v5 = vld [vmem:[#allocation5 + $0x28] sm:$0xff] }
  0x97   : > { %730 = vmatpush1.msra.mxu0 %v675_v14  ;;  %1160 = vperm.xlu1 %3001, %v1109_v32   ;;  %v633_v3 = vld [vmem:[%s3499_s28 + $0x18] sm:$0xff]  ;;  %v632_v6 = vld [vmem:[%s3499_s28 + $0x10] sm:$0xff]  ;;  %v635_v7 = vld [vmem:[%s3499_s28 + $0x28] sm:$0xff] }
  0x98   : > { %731 = vmatprep.subr.mxu0 %v3253_v1  ;;  %2579 = vmatpush3.msra.mxu1 %v906_v39  ;;  %v898_v8 = vld [vmem:[#allocation5 + $0x20] sm:$0xff]  ;;  %v637_v9 = vld [vmem:[%s3499_s28 + $0x38] sm:$0xff]  ;;  %v636_v10 = vld [vmem:[%s3499_s28 + $0x30] sm:$0xff] }
  0x99   : > { %732 = vmatpush1.msra.mxu0 %v674_v15  ;;  %2580 = vmatprep.subr.mxu1 %v905_v44  ;;  %v639_v11 = vld [vmem:[%s3499_s28 + $0x48] sm:$0xff]  ;;  %v638_v12 = vld [vmem:[%s3499_s28 + $0x40] sm:$0xff]  ;;  %v641_v13 = vld [vmem:[%s3499_s28 + $0x58] sm:$0xff] }
  0x9a   : > { %733 = vmatprep.subr.mxu0 %v3253_v1  ;;  %1165 = vperm.xlu0 %3000, %v1110_v36   ;;  %v640_v14 = vld [vmem:[%s3499_s28 + $0x50] sm:$0xff]  ;;  %v643_v15 = vld [vmem:[%s3499_s28 + $0x68] sm:$0xff]  ;;  %v649_v21 = vld [vmem:[%s3499_s28 + $0x98] sm:$0xff] }
  0x9b   : > { %734 = vmatpush1.msra.mxu0 %v673_v16  ;;  %1170 = vperm.xlu1 %3001, %v1111_v37   ;;  %v642_v16 = vld [vmem:[%s3499_s28 + $0x60] sm:$0xff]  ;;  %v644_v18 = vld [vmem:[%s3499_s28 + $0x70] sm:$0xff]  ;;  %v647_v19 = vld [vmem:[%s3499_s28 + $0x88] sm:$0xff] }
  0x9c   : > { %735 = vmatprep.subr.mxu0 %v3253_v1  ;;  %2581 = vmatpush3.msra.mxu1 %v905_v44  ;;  %v648_v22 = vld [vmem:[%s3499_s28 + $0x90] sm:$0xff]  ;;  %v653_v25 = vld [vmem:[%s3499_s28 + $0xb8] sm:$0xff]  ;;  %v655_v27 = vld [vmem:[%s3499_s28 + $0xc8] sm:$0xff] }
  0x9d   : > { %736 = vmatpush1.msra.mxu0 %v672_v17  ;;  %2582 = vmatprep.subr.mxu1 %v904_v49  ;;  %v645_v17 = vld [vmem:[%s3499_s28 + $0x78] sm:$0xff]  ;;  %v652_v26 = vld [vmem:[%s3499_s28 + $0xb0] sm:$0xff]  ;;  %v659_v31 = vld [vmem:[%s3499_s28 + $0xe8] sm:$0xff] }
  0x9e   : > { %737 = vmatprep.subr.mxu0 %v3253_v1  ;;  %1175 = vperm.xlu0 %3000, %v1112_v41   ;;  %v657_v29 = vld [vmem:[%s3499_s28 + $0xd8] sm:$0xff]  ;;  %v658_v32 = vld [vmem:[%s3499_s28 + $0xe0] sm:$0xff]  ;;  %v660_v34 = vld [vmem:[%s3499_s28 + $0xf0] sm:$0xff] }
  0x9f   : > { %738 = vmatpush1.msra.mxu0 %v671_v20  ;;  %1180 = vperm.xlu1 %3001, %v1113_v42   ;;  %v646_v20 = vld [vmem:[%s3499_s28 + $0x80] sm:$0xff]  ;;  %v665_v37 = vld [vmem:[%s3499_s28 + $0x118] sm:$0xff]  ;;  %v664_v39 = vld [vmem:[%s3499_s28 + $0x110] sm:$0xff] }
  0xa0   : > { %739 = vmatprep.subr.mxu0 %v3253_v1  ;;  %2583 = vmatpush3.msra.mxu1 %v904_v49  ;;  %v662_v36 = vld [vmem:[%s3499_s28 + $0x100] sm:$0xff]  ;;  %v896_v41 = vld [vmem:[#allocation5 + $0x10] sm:$0xff]  ;;  %v895_v42 = vld [vmem:[#allocation5 + $0x8] sm:$0xff] }
  0xa1   : > { %740 = vmatpush1.msra.mxu0 %v670_v23  ;;  %2584 = vmatprep.subr.mxu1 %v903_v54  ;;  %v651_v23 = vld [vmem:[%s3499_s28 + $0xa8] sm:$0xff]  ;;  %v669_v44 = vld [vmem:[%s3499_s28 + $0x138] sm:$0xff]  ;;  %v3713_v49 = vld [vmem:[#allocation8 + $0x70] sm:$0xff] }
  0xa2   : > { %741 = vmatprep.subr.mxu0 %v3253_v1  ;;  %1185 = vperm.xlu0 %3000, %v1114_v46   ;;  %v668_v46 = vld [vmem:[%s3499_s28 + $0x130] sm:$0xff] }
  0xa3   : > { %742 = vmatpush2.msra.mxu0 %v701_v24  ;;  %1190 = vperm.xlu1 %3001, %v1115_v47   ;;  %v650_v24 = vld [vmem:[%s3499_s28 + $0xa0] sm:$0xff]  ;;  %v1311_v47 = vld [vmem:[#allocation7 + $0x78] sm:$0xff] }
  0xa4   : > { %743 = vmatprep.subr.mxu0 %v3253_v1  ;;  %2585 = vmatpush3.msra.mxu1 %v903_v54 }
  0xa5   : > { %744 = vmatpush2.msra.mxu0 %v700_v28  ;;  %2586 = vmatprep.subr.mxu1 %v902_v59  ;;  %v654_v28 = vld [vmem:[%s3499_s28 + $0xc0] sm:$0xff] }
  0xa6   : > { %745 = vmatprep.subr.mxu0 %v3253_v1  ;;  %1195 = vperm.xlu0 %3000, %v1116_v51   ;;  %v3721_v51 = vld [vmem:[#allocation8 + $0x60] sm:$0xff] }
  0xa7   : > { %746 = vmatpush2.msra.mxu0 %v699_v30  ;;  %1200 = vperm.xlu1 %3001, %v1117_v52   ;;  %v656_v30 = vld [vmem:[%s3499_s28 + $0xd0] sm:$0xff]  ;;  %v3726_v52 = vld [vmem:[%s4158_s3] ss:$0 sm:$0xff] }
  0xa8   : > { %747 = vmatprep.subr.mxu0 %v3253_v1  ;;  %2587 = vmatpush3.msra.mxu1 %v902_v59  ;;  %v3739_v59 = vld [vmem:[#allocation8 + $0x48] sm:$0xff] }
  0xa9   : > { %748 = vmatpush2.msra.mxu0 %v698_v33  ;;  %2588 = vmatprep.subr.mxu1 %v901_v0  ;;  %v661_v33 = vld [vmem:[%s3499_s28 + $0xf8] sm:$0xff] }
  0xaa   : > { %749 = vmatprep.subr.mxu0 %v3253_v1  ;;  %1205 = vperm.xlu0 %3000, %v1118_v56   ;;  %v3735_v56 = vld [vmem:[#allocation8 + $0x50] sm:$0xff] }
  0xab   : > { %750 = vmatpush2.msra.mxu0 %v697_v35  ;;  %1210 = vperm.xlu1 %3001, %v1119_v57   ;;  %v663_v35 = vld [vmem:[%s3499_s28 + $0x108] sm:$0xff] }
  0xac   : > { %751 = vmatprep.subr.mxu0 %v3253_v1  ;;  %2589 = vmatpush3.msra.mxu1 %v901_v0 }
  0xad   : > { %752 = vmatpush2.msra.mxu0 %v696_v38  ;;  %2590 = vmatprep.subr.mxu1 %v900_v4  ;;  %v897_v38 = vld [vmem:[#allocation5 + $0x18] sm:$0xff] }
  0xae   : > { %753 = vmatprep.subr.mxu0 %v3253_v1  ;;  %1215 = vperm.xlu0 %3000, %v1120_v61  }
  0xaf   : > { %754 = vmatpush2.msra.mxu0 %v695_v40  ;;  %1220 = vperm.xlu1 %3001, %v1121_v62   ;;  %v667_v40 = vld [vmem:[%s3499_s28 + $0x128] sm:$0xff]  ;;  %v3744_v62 = vld [vmem:[#allocation8 + $0x40] sm:$0xff] }
  0xb0   : > { %755 = vmatprep.subr.mxu0 %v3253_v1  ;;  %2591 = vmatpush3.msra.mxu1 %v900_v4  ;;  %v1310_v4 = vld [vmem:[#allocation7 + $0x70] sm:$0xff] }
  0xb1   : > { %756 = vmatpush2.msra.mxu0 %v694_v43  ;;  %2592 = vmatprep.subr.mxu1 %v899_v5  ;;  %v666_v43 = vld [vmem:[%s3499_s28 + $0x120] sm:$0xff] }
  0xb2   : > { %757 = vmatprep.subr.mxu0 %v3253_v1  ;;  %2593 = vmatpush3.msra.mxu1 %v899_v5 }
  0xb3   : > { %758 = vmatpush2.msra.mxu0 %v693_v45  ;;  %2594 = vmatprep.subr.mxu1 %v898_v8  ;;  %v894_v45 = vld [vmem:[#allocation5] sm:$0xff] }
  0xb4   : > { %759 = vmatprep.subr.mxu0 %v3253_v1  ;;  %2595 = vmatpush3.msra.mxu1 %v898_v8  ;;  %v1309_v8 = vld [vmem:[#allocation7 + $0x68] sm:$0xff] }
  0xb5   : > { %760 = vmatpush2.msra.mxu0 %v692_v48  ;;  %2596 = vmatprep.subr.mxu1 %v897_v38  ;;  %v3711_v48 = vld [vmem:[#allocation8 + $0x78] sm:$0xff] }
  0xb6   : > { %761 = vmatprep.subr.mxu0 %v3253_v1  ;;  %2597 = vmatpush3.msra.mxu1 %v897_v38 }
  0xb7   : > { %762 = vmatpush2.msra.mxu0 %v691_v50  ;;  %2598 = vmatprep.subr.mxu1 %v896_v41  ;;  %v3717_v50 = vld [vmem:[#allocation8 + $0x68] sm:$0xff] }
  0xb8   : > { %763 = vmatprep.subr.mxu0 %v3253_v1  ;;  %2599 = vmatpush3.msra.mxu1 %v896_v41 }
  0xb9   : > { %764 = vmatpush2.msra.mxu0 %v690_v53  ;;  %2600 = vmatprep.subr.mxu1 %v895_v42  ;;  %v3730_v53 = vld [vmem:[#allocation8 + $0x58] sm:$0xff] }
  0xba   : > { %765 = vmatprep.subr.mxu0 %v3253_v1  ;;  %2601 = vmatpush3.msra.mxu1 %v895_v42  ;;  %v1298_v42 = vld [vmem:[#allocation7 + $0x10] sm:$0xff] }
  0xbb   : > { %766 = vmatpush2.msra.mxu0 %v689_v55  ;;  %2602 = vmatprep.subr.mxu1 %v894_v45 }
  0xbc   : > { %767 = vmatprep.subr.mxu0 %v3253_v1  ;;  %2603 = vmatpush3.msra.mxu1 %v894_v45  ;;  %v1297_v45 = vld [vmem:[#allocation7 + $0x8] sm:$0xff] }
  0xbd   : > { %768 = vmatpush2.msra.mxu0 %v688_v58  ;;  %2634 = vmatprep.subr.mxu1 %v1311_v47 }
  0xbe   : > { %769 = vmatprep.subr.mxu0 %v3253_v1 }
  0xbf   : > { %770 = vmatpush2.msra.mxu0 %v687_v60 }
  0xc0   : > { %771 = vmatprep.subr.mxu0 %v3253_v1  ;;  %v634_v1 = vld [vmem:[%s3499_s28 + $0x20] sm:$0xff] }
  0xc1   : > { %772 = vmatpush2.msra.mxu0 %v686_v63 }
  0xc2   : > { %774 = vmatmul.mubr.f32.vlgmr.msra.gmra.mxu0 %v630_v2  ;;  %2758 = vmatprep.subr.mxu0 %v3711_v48  ;;  %v3748_v2 = vld [vmem:[#allocation8 + $0x38] sm:$0xff] }
  0xc3   : > { %778 = vmatprep.mubr.f32.mxu0 %v633_v3  ;;  %2759 = vmatpush3.msra.mxu0 %v3711_v48 }
  0xc4   : > { %2760 = vmatprep.subr.mxu0 %v3713_v49 }
  0xc5   : > { %2761 = vmatpush3.msra.mxu0 %v3713_v49 }
  0xc6   : > { %779 = vmatmul.mubr.f32.gmra.mxu0 %v632_v6  ;;  %2762 = vmatprep.subr.mxu0 %v3717_v50  ;;  %v3753_v6 = vld [vmem:[#allocation8 + $0x30] sm:$0xff] }
  0xc7   : > { %783 = vmatprep.mubr.f32.mxu0 %v635_v7  ;;  %2763 = vmatpush3.msra.mxu0 %v3717_v50 }
  0xc8   : > { %2764 = vmatprep.subr.mxu0 %v3721_v51 }
  0xc9   : > { %2765 = vmatpush3.msra.mxu0 %v3721_v51 }
  0xca   : > { %784 = vmatmul.mubr.f32.gmra.mxu0 %v634_v1  ;;  %2766 = vmatprep.subr.mxu0 %v3730_v53 }
  0xcb   : > { %788 = vmatprep.mubr.f32.mxu0 %v637_v9  ;;  %2767 = vmatpush3.msra.mxu0 %v3730_v53 }
  0xcc   : > { %2768 = vmatprep.subr.mxu0 %v3735_v56 }
  0xcd   : > { %2769 = vmatpush3.msra.mxu0 %v3735_v56 }
  0xce   : > { %789 = vmatmul.mubr.f32.gmra.mxu0 %v636_v10  ;;  %2770 = vmatprep.subr.mxu0 %v3739_v59  ;;  %v1308_v10 = vld [vmem:[#allocation7 + $0x60] sm:$0xff] }
  0xcf   : > { %793 = vmatprep.mubr.f32.mxu0 %v639_v11  ;;  %2771 = vmatpush3.msra.mxu0 %v3739_v59  ;;  %v3758_v11 = vld [vmem:[#allocation8 + $0x28] sm:$0xff] }
  0xd0   : > { %2772 = vmatprep.subr.mxu0 %v3744_v62 }
  0xd1   : > { %2773 = vmatpush3.msra.mxu0 %v3744_v62 }
  0xd2   : > { %794 = vmatmul.mubr.f32.gmra.mxu0 %v638_v12  ;;  %2774 = vmatprep.subr.mxu0 %v3748_v2 }
  0xd3   : > { %798 = vmatprep.mubr.f32.mxu0 %v641_v13  ;;  %2775 = vmatpush3.msra.mxu0 %v3748_v2 }
  0xd4   : > { %2776 = vmatprep.subr.mxu0 %v3753_v6 }
  0xd5   : > { %2777 = vmatpush3.msra.mxu0 %v3753_v6 }
  0xd6   : > { %799 = vmatmul.mubr.f32.gmra.mxu0 %v640_v14  ;;  %v1307_v14 = vld [vmem:[#allocation7 + $0x58] sm:$0xff]  ;;  %2778 = vmatprep.subr.mxu0 %v3758_v11 }
  0xd7   : > { %803 = vmatprep.mubr.f32.mxu0 %v643_v15  ;;  %2779 = vmatpush3.msra.mxu0 %v3758_v11 }
  0xda   : > { %804 = vmatmul.mubr.f32.gmra.mxu0 %v642_v16  ;;  %v3763_v16 = vld [vmem:[#allocation8 + $0x20] sm:$0xff] }
  0xdb   : > { %808 = vmatprep.mubr.f32.mxu0 %v645_v17  ;;  %2780 = vmatprep.subr.mxu0 %v3763_v16 }
  0xdc   : > { %2781 = vmatpush3.msra.mxu0 %v3763_v16 }
  0xde   : > { %809 = vmatmul.mubr.f32.gmra.mxu0 %v644_v18  ;;  %v1306_v18 = vld [vmem:[#allocation7 + $0x50] sm:$0xff] }
  0xdf   : > { %813 = vmatprep.mubr.f32.mxu0 %v647_v19 }
  0xe2   : > { %814 = vmatmul.mubr.f32.gmra.mxu0 %v646_v20 }
  0xe3   : > { %818 = vmatprep.mubr.f32.mxu0 %v649_v21  ;;  %v1305_v21 = vld [vmem:[#allocation7 + $0x48] sm:$0xff] }
  0xe6   : > { %819 = vmatmul.mubr.f32.gmra.mxu0 %v648_v22 }
  0xe7   : > { %823 = vmatprep.mubr.f32.mxu0 %v651_v23 }
  0xea   : > { %824 = vmatmul.mubr.f32.gmra.mxu0 %v650_v24  ;;  %v1304_v24 = vld [vmem:[#allocation7 + $0x40] sm:$0xff] }
  0xeb   : > { %828 = vmatprep.mubr.f32.mxu0 %v653_v25 }
  0xee   : > { %829 = vmatmul.mubr.f32.gmra.mxu0 %v652_v26 }
  0xef   : > { %833 = vmatprep.mubr.f32.mxu0 %v655_v27  ;;  %v1303_v27 = vld [vmem:[#allocation7 + $0x38] sm:$0xff] }
  0xf2   : > { %834 = vmatmul.mubr.f32.gmra.mxu0 %v654_v28 }
  0xf3   : > { %838 = vmatprep.mubr.f32.mxu0 %v657_v29 }
  0xf6   : > { %839 = vmatmul.mubr.f32.gmra.mxu0 %v656_v30  ;;  %v1302_v30 = vld [vmem:[#allocation7 + $0x30] sm:$0xff] }
  0xf7   : > { %843 = vmatprep.mubr.f32.mxu0 %v659_v31 }
  0xfa   : > { %844 = vmatmul.mubr.f32.gmra.mxu0 %v658_v32 }
  0xfb   : > { %848 = vmatprep.mubr.f32.mxu0 %v661_v33  ;;  %v1301_v33 = vld [vmem:[#allocation7 + $0x28] sm:$0xff] }
  0xfe   : > { %849 = vmatmul.mubr.f32.gmra.mxu0 %v660_v34 }
  0xff   : > { %853 = vmatprep.mubr.f32.mxu0 %v663_v35 }
 0x102   : > { %854 = vmatmul.mubr.f32.gmra.mxu0 %v662_v36  ;;  %v1300_v36 = vld [vmem:[#allocation7 + $0x20] sm:$0xff] }
 0x103   : > { %858 = vmatprep.mubr.f32.mxu0 %v665_v37 }
 0x106   : > { %859 = vmatmul.mubr.f32.gmra.mxu0 %v664_v39  ;;  %v1299_v39 = vld [vmem:[#allocation7 + $0x18] sm:$0xff] }
 0x107   : > { %863 = vmatprep.mubr.f32.mxu0 %v667_v40 }
 0x10a   : > { %864 = vmatmul.mubr.f32.gmra.mxu0 %v666_v43 }
 0x10b   : > { %868 = vmatprep.mubr.f32.mxu0 %v669_v44 }
 0x10e   : > { %869 = vmatmul.mubr.f32.gmra.mxu0 %v668_v46 }
 0x182   : > { %v775_v54 = vpop.f32.mrf.mxu0 }
 0x183   : > { %v776_v55 = vadd.f32 %v3726_v52, %v775_v54  ;;  %v1296_v54 = vld [vmem:[#allocation7] sm:$0xff] }
 0x184   : > { %v777_v57 = vpop.f32.mrf.mxu0 }
 0x185   : > { %v874_v58 = vmax.f32 %v776_v55, 0.0 }
 0x186   : > { %v780_v60 = vpop.f32.mrf.mxu0 }
 0x187   : > { %v781_v61 = vadd.f32 %v3726_v52, %v780_v60  ;;  %2604 = vmatprep.mubr.f32.mxu1 %v874_v58 }
 0x188   : > { %v782_v63 = vpop.f32.mrf.mxu0 }
 0x189   : > { %v875_v0 = vmax.f32 %v781_v61, 0.0 }
 0x18a   : > { %v785_v3 = vpop.f32.mrf.mxu0 }
 0x18b   : > { %v786_v5 = vadd.f32 %v3726_v52, %v785_v3  ;;  %2605 = vmatmul.mubr.f32.vlgmr.msra.gmra.mxu1 %v875_v0 }
 0x18c   : > { %v787_v7 = vpop.f32.mrf.mxu0  ;;  %2635 = vmatpush3.msra.mxu1 %v1311_v47 }
 0x18d   : > { %v876_v1 = vmax.f32 %v786_v5, 0.0  ;;  %2636 = vmatprep.subr.mxu1 %v1310_v4 }
 0x18e   : > { %v790_v9 = vpop.f32.mrf.mxu0  ;;  %2637 = vmatpush3.msra.mxu1 %v1310_v4 }
 0x18f   : > { %v791_v12 = vadd.f32 %v3726_v52, %v790_v9  ;;  %2607 = vmatprep.mubr.f32.mxu1 %v876_v1  ;;  %2638 = vmatprep.subr.mxu1 %v1309_v8 }
 0x190   : > { %v792_v13 = vpop.f32.mrf.mxu0  ;;  %2639 = vmatpush3.msra.mxu1 %v1309_v8 }
 0x191   : > { %v877_v15 = vmax.f32 %v791_v12, 0.0  ;;  %2640 = vmatprep.subr.mxu1 %v1308_v10 }
 0x192   : > { %v795_v17 = vpop.f32.mrf.mxu0  ;;  %2641 = vmatpush3.msra.mxu1 %v1308_v10  ;;  %v1126_v10 = vpop.permute.xlu0 %1125 }
 0x193   : > { %v796_v19 = vadd.f32 %v3726_v52, %v795_v17  ;;  %2608 = vmatmul.mubr.f32.gmra.mxu1 %v877_v15  ;;  %2642 = vmatprep.subr.mxu1 %v1307_v14  ;;  %v1136_v15 = vpop.permute.xlu1 %1135 }
 0x194   : > { %v797_v20 = vpop.f32.mrf.mxu0  ;;  %2643 = vmatpush3.msra.mxu1 %v1307_v14 }
 0x195   : > { %v878_v22 = vmax.f32 %v796_v19, 0.0  ;;  %2644 = vmatprep.subr.mxu1 %v1306_v18 }
 0x196   : > { %v800_v23 = vpop.f32.mrf.mxu0  ;;  %2645 = vmatpush3.msra.mxu1 %v1306_v18  ;;  %v1131_v20 = vpop.permute.xlu0 %1130 }
 0x197   : > { %v801_v25 = vadd.f32 %v3726_v52, %v800_v23  ;;  %2610 = vmatprep.mubr.f32.mxu1 %v878_v22  ;;  %2646 = vmatprep.subr.mxu1 %v1305_v21 }
 0x198   : > { %v802_v26 = vpop.f32.mrf.mxu0  ;;  %2647 = vmatpush3.msra.mxu1 %v1305_v21 }
 0x199   : > { %v879_v28 = vmax.f32 %v801_v25, 0.0  ;;  %2648 = vmatprep.subr.mxu1 %v1304_v24 }
 0x19a   : > { %v805_v29 = vpop.f32.mrf.mxu0  ;;  %2649 = vmatpush3.msra.mxu1 %v1304_v24  ;;  %v1141_v24 = vpop.permute.xlu1 %1140 }
 0x19b   : > { %v806_v31 = vadd.f32 %v3726_v52, %v805_v29  ;;  %2611 = vmatmul.mubr.f32.gmra.mxu1 %v879_v28  ;;  %2650 = vmatprep.subr.mxu1 %v1303_v27  ;;  %v1146_v28 = vpop.permute.xlu0 %1145 }
 0x19c   : > { %v807_v32 = vpop.f32.mrf.mxu0  ;;  %2651 = vmatpush3.msra.mxu1 %v1303_v27 }
 0x19d   : > { %v880_v34 = vmax.f32 %v806_v31, 0.0  ;;  %2652 = vmatprep.subr.mxu1 %v1302_v30 }
 0x19e   : > { %v810_v35 = vpop.f32.mrf.mxu0  ;;  %2653 = vmatpush3.msra.mxu1 %v1302_v30  ;;  %v1151_v32 = vpop.permute.xlu1 %1150 }
 0x19f   : > { %v811_v37 = vadd.f32 %v3726_v52, %v810_v35  ;;  %2613 = vmatprep.mubr.f32.mxu1 %v880_v34  ;;  %2654 = vmatprep.subr.mxu1 %v1301_v33  ;;  %v3784_v34 = vld [vmem:[%s4161_s6] ss:$0 sm:$0xff] }
 0x1a0   : > { %v812_v38 = vpop.f32.mrf.mxu0  ;;  %2655 = vmatpush3.msra.mxu1 %v1301_v33 }
 0x1a1   : > { %v881_v40 = vmax.f32 %v811_v37, 0.0  ;;  %2656 = vmatprep.subr.mxu1 %v1300_v36  ;;  %v1156_v37 = vpop.permute.xlu0 %1155 }
 0x1a2   : > { %v815_v41 = vpop.f32.mrf.mxu0  ;;  %2657 = vmatpush3.msra.mxu1 %v1300_v36 }
 0x1a3   : > { %v816_v43 = vadd.f32 %v3726_v52, %v815_v41  ;;  %2614 = vmatmul.mubr.f32.gmra.mxu1 %v881_v40  ;;  %2658 = vmatprep.subr.mxu1 %v1299_v39  ;;  %v3791_v41 = vld [vmem:[%s4162_s7] ss:$0 sm:$0xff] }
 0x1a4   : > { %v817_v44 = vpop.f32.mrf.mxu0  ;;  %2659 = vmatpush3.msra.mxu1 %v1299_v39  ;;  %v1229_v39 = vmul.f32 %v3784_v34, %v1126_v10  ;;  %v1232_v10 = vmul.f32 %v3784_v34, %v1141_v24 }
 0x1a5   : > { %v882_v46 = vmax.f32 %v816_v43, 0.0  ;;  %2660 = vmatprep.subr.mxu1 %v1298_v42  ;;  %v1161_v43 = vpop.permute.xlu1 %1160 }
 0x1a6   : > { %v820_v47 = vpop.f32.mrf.mxu0  ;;  %2661 = vmatpush3.msra.mxu1 %v1298_v42  ;;  %v1236_v24 = vmul.f32 %v3784_v34, %v1161_v43 }
 0x1a7   : > { %v821_v55 = vadd.f32 %v3726_v52, %v820_v47  ;;  %2616 = vmatprep.mubr.f32.mxu1 %v882_v46  ;;  %2662 = vmatprep.subr.mxu1 %v1297_v45  ;;  %v1256_v47 = vadd.f32 %v3791_v41, %v1229_v39 }
 0x1a8   : > { %v822_v57 = vpop.f32.mrf.mxu0  ;;  %2663 = vmatpush3.msra.mxu1 %v1297_v45  ;;  %v3793_v45 = vld [vmem:[#allocation8 + $0x18] sm:$0xff] }
 0x1a9   : > { %v883_v58 = vmax.f32 %v821_v55, 0.0  ;;  %2664 = vmatprep.subr.mxu1 %v1296_v54  ;;  %2782 = vmatprep.subr.mxu0 %v3793_v45  ;;  %v3800_v57 = vld [vmem:[#allocation8 + $0x10] sm:$0xff] }
 0x1aa   : > { %v825_v60 = vpop.f32.mrf.mxu0  ;;  %2665 = vmatpush3.msra.mxu1 %v1296_v54  ;;  %v1231_v54 = vmul.f32 %v3784_v34, %v1136_v15  ;;  %2783 = vmatpush3.msra.mxu0 %v3793_v45 }
 0x1ab   : > { %v826_v61 = vadd.f32 %v3726_v52, %v825_v60  ;;  %2617 = vmatmul.mubr.f32.gmra.mxu1 %v883_v58  ;;  %v1230_v58 = vmul.f32 %v3784_v34, %v1131_v20  ;;  %v1166_v60 = vpop.permute.xlu0 %1165  ;;  %2784 = vmatprep.subr.mxu0 %v3800_v57  ;;  %v1235_v20 = vmul.f32 %v3784_v34, %v1156_v37 }
 0x1ac   : > { %v827_v63 = vpop.f32.mrf.mxu0  ;;  %2785 = vmatpush3.msra.mxu0 %v3800_v57 }
 0x1ad   : > { %v884_v0 = vmax.f32 %v826_v61, 0.0 }
 0x1ae   : > { %v830_v3 = vpop.f32.mrf.mxu0 }
 0x1af   : > { %v831_v4 = vadd.f32 %v3726_v52, %v830_v3  ;;  %2619 = vmatprep.mubr.f32.mxu1 %v884_v0  ;;  %v3805_v0 = vld [vmem:[#allocation8 + $0x8] sm:$0xff] }
 0x1b0   : > { %v832_v5 = vpop.f32.mrf.mxu0  ;;  %2786 = vmatprep.subr.mxu0 %v3805_v0 }
 0x1b1   : > { %v885_v7 = vmax.f32 %v831_v4, 0.0  ;;  %v1276_v4 = vmax.f32 %v1256_v47, 0.0  ;;  %v1258_v5 = vadd.f32 %v3791_v41, %v1231_v54  ;;  %2787 = vmatpush3.msra.mxu0 %v3805_v0 }
 0x1b2   : > { %v835_v8 = vpop.f32.mrf.mxu0 }
 0x1b3   : > { %v836_v1 = vadd.f32 %v3726_v52, %v835_v8  ;;  %2620 = vmatmul.mubr.f32.gmra.mxu1 %v885_v7  ;;  %v1171_v7 = vpop.permute.xlu1 %1170 }
 0x1b4   : > { %v837_v9 = vpop.f32.mrf.mxu0 }
 0x1b5   : > { %v886_v12 = vmax.f32 %v836_v1, 0.0  ;;  %v3811_v1 = vld [vmem:[#allocation8] sm:$0xff]  ;;  %v1257_v9 = vadd.f32 %v3791_v41, %v1230_v58 }
 0x1b6   : > { %v840_v13 = vpop.f32.mrf.mxu0  ;;  %2788 = vmatprep.subr.mxu0 %v3811_v1 }
 0x1b7   : > { %v841_v14 = vadd.f32 %v3726_v52, %v840_v13  ;;  %2622 = vmatprep.mubr.f32.mxu1 %v886_v12  ;;  %2789 = vmatpush3.msra.mxu0 %v3811_v1  ;;  %v1176_v13 = vpop.permute.xlu0 %1175  ;;  %v1277_v15 = vmax.f32 %v1257_v9, 0.0 }
 0x1b8   : > { %v842_v17 = vpop.f32.mrf.mxu0 }
 0x1b9   : > { %v887_v18 = vmax.f32 %v841_v14, 0.0  ;;  %v1278_v14 = vmax.f32 %v1258_v5, 0.0  ;;  %v1259_v17 = vadd.f32 %v3791_v41, %v1232_v10 }
 0x1ba   : > { %v845_v19 = vpop.f32.mrf.mxu0 }
 0x1bb   : > { %v846_v21 = vadd.f32 %v3726_v52, %v845_v19  ;;  %2623 = vmatmul.mubr.f32.gmra.mxu1 %v887_v18  ;;  %v1234_v18 = vmul.f32 %v3784_v34, %v1151_v32  ;;  %v1238_v32 = vmul.f32 %v3784_v34, %v1171_v7 }
 0x1bc   : > { %v847_v22 = vpop.f32.mrf.mxu0 }
 0x1bd   : > { %v888_v23 = vmax.f32 %v846_v21, 0.0  ;;  %v1181_v21 = vpop.permute.xlu1 %1180  ;;  %v1279_v22 = vmax.f32 %v1259_v17, 0.0  ;;  %v1265_v39 = vadd.f32 %v3791_v41, %v1238_v32  ;;  %v1531_v32 = vld [vmem:[#allocation10 + $0x58] sm:$0xff] }
 0x1be   : > { %v850_v25 = vpop.f32.mrf.mxu0 }
 0x1bf   : > { %v851_v26 = vadd.f32 %v3726_v52, %v850_v25  ;;  %2625 = vmatprep.mubr.f32.mxu1 %v888_v23  ;;  %v1261_v23 = vadd.f32 %v3791_v41, %v1234_v18  ;;  %v1186_v25 = vpop.permute.xlu0 %1185  ;;  %v1285_v47 = vmax.f32 %v1265_v39, 0.0  ;;  %v1524_v39 = vld [vmem:[#allocation10 + $0x20] sm:$0xff] }
 0x1c0   : > { %v852_v27 = vpop.f32.mrf.mxu0 }
 0x1c1   : > { %v889_v29 = vmax.f32 %v851_v26, 0.0  ;;  %v1262_v27 = vadd.f32 %v3791_v41, %v1235_v20 }
 0x1c2   : > { %v855_v30 = vpop.f32.mrf.mxu0 }
 0x1c3   : > { %v856_v31 = vadd.f32 %v3726_v52, %v855_v30  ;;  %2626 = vmatmul.mubr.f32.gmra.mxu1 %v889_v29  ;;  %v1191_v29 = vpop.permute.xlu1 %1190  ;;  %v1281_v30 = vmax.f32 %v1261_v23, 0.0  ;;  %v1196_v37 = vpop.permute.xlu0 %1195 }
 0x1c4   : > { %v857_v33 = vpop.f32.mrf.mxu0 }
 0x1c5   : > { %v890_v35 = vmax.f32 %v856_v31, 0.0  ;;  %v1263_v31 = vadd.f32 %v3791_v41, %v1236_v24  ;;  %v1282_v33 = vmax.f32 %v1262_v27, 0.0 }
 0x1c6   : > { %v860_v36 = vpop.f32.mrf.mxu0 }
 0x1c7   : > { %v861_v38 = vadd.f32 %v3726_v52, %v860_v36  ;;  %2628 = vmatprep.mubr.f32.mxu1 %v890_v35  ;;  %v1239_v36 = vmul.f32 %v3784_v34, %v1176_v13  ;;  %v1206_v58 = vpop.permute.xlu0 %1205 }
 0x1c8   : > { %v862_v40 = vpop.f32.mrf.mxu0  ;;  %v1245_v10 = vmul.f32 %v3784_v34, %v1206_v58 }
 0x1c9   : > { %v891_v42 = vmax.f32 %v861_v38, 0.0  ;;  %v1283_v38 = vmax.f32 %v1263_v31, 0.0  ;;  %v1240_v40 = vmul.f32 %v3784_v34, %v1181_v21  ;;  %v1266_v43 = vadd.f32 %v3791_v41, %v1239_v36  ;;  %v1532_v31 = vld [vmem:[#allocation10 + $0x60] sm:$0xff]  ;;  %v1527_v36 = vld [vmem:[#allocation10 + $0x38] sm:$0xff] }
 0x1ca   : > { %v865_v44 = vpop.f32.mrf.mxu0  ;;  %v1272_v17 = vadd.f32 %v3791_v41, %v1245_v10 }
 0x1cb   : > { %v866_v46 = vadd.f32 %v3726_v52, %v865_v44  ;;  %2629 = vmatmul.mubr.f32.gmra.mxu1 %v891_v42  ;;  %v1241_v44 = vmul.f32 %v3784_v34, %v1186_v25  ;;  %v1267_v54 = vadd.f32 %v3791_v41, %v1240_v40  ;;  %v1523_v40 = vld [vmem:[#allocation10 + $0x18] sm:$0xff] }
 0x1cc   : > { %v867_v55 = vpop.f32.mrf.mxu0  ;;  %v1292_v23 = vmax.f32 %v1272_v17, 0.0 }
 0x1cd   : > { %v892_v61 = vmax.f32 %v866_v46, 0.0  ;;  %v1201_v46 = vpop.permute.xlu1 %1200  ;;  %v1242_v55 = vmul.f32 %v3784_v34, %v1191_v29  ;;  %v1534_v29 = vld [vmem:[#allocation10 + $0x70] sm:$0xff] }
 0x1ce   : > { %v870_v63 = vpop.f32.mrf.mxu0  ;;  %v1244_v7 = vmul.f32 %v3784_v34, %v1201_v46  ;;  %v3854_v46 = vld [vmem:[%s4160_s5] ss:$0 sm:$0xff] }
 0x1cf   : > { %v871_v3 = vadd.f32 %v3726_v52, %v870_v63  ;;  %2631 = vmatprep.mubr.f32.mxu1 %v892_v61  ;;  %v1233_v52 = vmul.f32 %v3784_v34, %v1146_v28  ;;  %v1237_v28 = vmul.f32 %v3784_v34, %v1166_v60  ;;  %v1286_v60 = vmax.f32 %v1266_v43, 0.0  ;;  %v1521_v43 = vld [vmem:[#allocation10 + $0x8] sm:$0xff] }
 0x1d0   : > { %v872_v8 = vpop.f32.mrf.mxu0  ;;  %v1268_v61 = vadd.f32 %v3791_v41, %v1241_v44  ;;  %v1243_v63 = vmul.f32 %v3784_v34, %v1196_v37  ;;  %v1269_v5 = vadd.f32 %v3791_v41, %v1242_v55  ;;  %v1271_v13 = vadd.f32 %v3791_v41, %v1244_v7  ;;  %v1526_v37 = vld [vmem:[#allocation10 + $0x30] sm:$0xff]  ;;  %v1520_v44 = vld [vmem:[#allocation10] sm:$0xff] }
 0x1d1   : > { %v893_v12 = vmax.f32 %v871_v3, 0.0  ;;  %v1260_v19 = vadd.f32 %v3791_v41, %v1233_v52  ;;  %v1264_v35 = vadd.f32 %v3791_v41, %v1237_v28  ;;  %v1211_v3 = vpop.permute.xlu1 %1210  ;;  %v1535_v28 = vld [vmem:[#allocation10 + $0x78] sm:$0xff] }
 0x1d2   : > { %v1288_v8 = vmax.f32 %v1268_v61, 0.0  ;;  %v1270_v9 = vadd.f32 %v3791_v41, %v1243_v63  ;;  %v1289_v52 = vmax.f32 %v1269_v5, 0.0  ;;  %v1291_v20 = vmax.f32 %v1271_v13, 0.0  ;;  %2696 = vmatprep.subr.mxu1 %v1535_v28 }
 0x1d3   : > { %2632 = vmatmul.mubr.f32.gmra.mxu1 %v893_v12  ;;  %v1280_v26 = vmax.f32 %v1260_v19, 0.0  ;;  %v1284_v42 = vmax.f32 %v1264_v35, 0.0  ;;  %v1216_v12 = vpop.permute.xlu0 %1215  ;;  %v1528_v35 = vld [vmem:[#allocation10 + $0x40] sm:$0xff] }
 0x1d4   : > { %2666 = vmatprep.mubr.f32.mxu1 %v1276_v4  ;;  %v1287_v4 = vmax.f32 %v1267_v54, 0.0  ;;  %v1247_v18 = vmul.f32 %v3784_v34, %v1216_v12 }
 0x1d5   : > { %v1221_v19 = vpop.permute.xlu1 %1220 }
 0x1d6   : > { %v1274_v24 = vadd.f32 %v3791_v41, %v1247_v18 }
 0x1d7   : > { %2667 = vmatmul.mubr.f32.vlgmr.msra.gmra.mxu1 %v1277_v15  ;;  %v1290_v15 = vmax.f32 %v1270_v9, 0.0 }
 0x1d8   : > { %2669 = vmatprep.mubr.f32.mxu1 %v1278_v14  ;;  %v1246_v14 = vmul.f32 %v3784_v34, %v1211_v3  ;;  %v1294_v27 = vmax.f32 %v1274_v24, 0.0  ;;  %2697 = vmatpush3.msra.mxu1 %v1535_v28 }
 0x1d9   : > { %2698 = vmatprep.subr.mxu1 %v1534_v29 }
 0x1da   : > { %v1273_v21 = vadd.f32 %v3791_v41, %v1246_v14  ;;  %2699 = vmatpush3.msra.mxu1 %v1534_v29 }
 0x1db   : > { %2670 = vmatmul.mubr.f32.gmra.mxu1 %v1279_v22  ;;  %v1248_v22 = vmul.f32 %v3784_v34, %v1221_v19  ;;  %v1533_v34 = vld [vmem:[#allocation10 + $0x68] sm:$0xff] }
 0x1dc   : > { %2672 = vmatprep.mubr.f32.mxu1 %v1280_v26  ;;  %v1293_v25 = vmax.f32 %v1273_v21, 0.0  ;;  %2700 = vmatprep.subr.mxu1 %v1533_v34 }
 0x1dd   : > { %v1275_v26 = vadd.f32 %v3791_v41, %v1248_v22  ;;  %2701 = vmatpush3.msra.mxu1 %v1533_v34  ;;  %v1530_v41 = vld [vmem:[#allocation10 + $0x50] sm:$0xff] }
 0x1de   : > { %2702 = vmatprep.subr.mxu1 %v1532_v31 }
 0x1df   : > { %2673 = vmatmul.mubr.f32.gmra.mxu1 %v1281_v30  ;;  %v1295_v30 = vmax.f32 %v1275_v26, 0.0 }
 0x1e0   : > { %2675 = vmatprep.mubr.f32.mxu1 %v1282_v33  ;;  %2703 = vmatpush3.msra.mxu1 %v1532_v31  ;;  %v1529_v33 = vld [vmem:[#allocation10 + $0x48] sm:$0xff] }
 0x1e1   : > { %2704 = vmatprep.subr.mxu1 %v1531_v32 }
 0x1e2   : > { %2705 = vmatpush3.msra.mxu1 %v1531_v32 }
 0x1e3   : > { %2676 = vmatmul.mubr.f32.gmra.mxu1 %v1283_v38  ;;  %2706 = vmatprep.subr.mxu1 %v1530_v41  ;;  %v1525_v38 = vld [vmem:[#allocation10 + $0x28] sm:$0xff] }
 0x1e4   : > { %2678 = vmatprep.mubr.f32.mxu1 %v1284_v42  ;;  %2707 = vmatpush3.msra.mxu1 %v1530_v41  ;;  %v1522_v42 = vld [vmem:[#allocation10 + $0x10] sm:$0xff] }
 0x1e5   : > { %2708 = vmatprep.subr.mxu1 %v1529_v33 }
 0x1e6   : > { %2709 = vmatpush3.msra.mxu1 %v1529_v33 }
 0x1e7   : > { %2679 = vmatmul.mubr.f32.gmra.mxu1 %v1285_v47  ;;  %2710 = vmatprep.subr.mxu1 %v1528_v35 }
 0x1e8   : > { %2681 = vmatprep.mubr.f32.mxu1 %v1286_v60  ;;  %2711 = vmatpush3.msra.mxu1 %v1528_v35 }
 0x1e9   : > { %2712 = vmatprep.subr.mxu1 %v1527_v36 }
 0x1ea   : > { %2713 = vmatpush3.msra.mxu1 %v1527_v36 }
 0x1eb   : > { %2682 = vmatmul.mubr.f32.gmra.mxu1 %v1287_v4  ;;  %2714 = vmatprep.subr.mxu1 %v1526_v37 }
 0x1ec   : > { %2684 = vmatprep.mubr.f32.mxu1 %v1288_v8  ;;  %2715 = vmatpush3.msra.mxu1 %v1526_v37 }
 0x1ed   : > { %2716 = vmatprep.subr.mxu1 %v1525_v38 }
 0x1ee   : > { %2717 = vmatpush3.msra.mxu1 %v1525_v38 }
 0x1ef   : > { %2685 = vmatmul.mubr.f32.gmra.mxu1 %v1289_v52  ;;  %2718 = vmatprep.subr.mxu1 %v1524_v39 }
 0x1f0   : > { %2687 = vmatprep.mubr.f32.mxu1 %v1290_v15  ;;  %2719 = vmatpush3.msra.mxu1 %v1524_v39 }
 0x1f1   : > { %2720 = vmatprep.subr.mxu1 %v1523_v40 }
 0x1f2   : > { %2721 = vmatpush3.msra.mxu1 %v1523_v40 }
 0x1f3   : > { %2688 = vmatmul.mubr.f32.gmra.mxu1 %v1291_v20  ;;  %2722 = vmatprep.subr.mxu1 %v1522_v42 }
 0x1f4   : > { %2690 = vmatprep.mubr.f32.mxu1 %v1292_v23  ;;  %2723 = vmatpush3.msra.mxu1 %v1522_v42  ;;  %v3887_v42 = vld [vmem:[%s4164_s9] ss:$0 sm:$0xff] }
 0x1f5   : > { %2724 = vmatprep.subr.mxu1 %v1521_v43 }
 0x1f6   : > { %2725 = vmatpush3.msra.mxu1 %v1521_v43 }
 0x1f7   : > { %2691 = vmatmul.mubr.f32.gmra.mxu1 %v1293_v25  ;;  %2726 = vmatprep.subr.mxu1 %v1520_v44 }
 0x1f8   : > { %2693 = vmatprep.mubr.f32.mxu1 %v1294_v27  ;;  %2727 = vmatpush3.msra.mxu1 %v1520_v44 }
 0x1f9   : > { %2820 = vmatprep.subr.mxu1 %v3711_v48 }
 0x1fb   : > { %2694 = vmatmul.mubr.f32.gmra.mxu1 %v1295_v30 }
 0x24b   : > { %v2606_v47 = vpop.f32.mrf.mxu1 }
 0x24c   : > { %v989_v54 = vadd.f32 %v2606_v47, %v3854_v46 }
 0x24d   : > { %v983_v55 = vpop.f32.mrf.mxu1 }
 0x24e   : > { %v984_v58 = vadd.f32 %v3854_v46, %v983_v55  ;;  %v1083_v61 = vmax.f32 %v989_v54, 0.0 }
 0x250   : > { %v1082_v60 = vmax.f32 %v984_v58, 0.0 }
 0x252   : > { %2790 = vmatprep.mubr.f32.mxu0 %v1082_v60 }
 0x253   : > { %v2609_v63 = vpop.f32.mrf.mxu1  ;;  %2791 = vmatmul.mubr.f32.vlgmr.msra.gmra.mxu0 %v1083_v61 }
 0x254   : > { %v999_v3 = vadd.f32 %v2609_v63, %v3854_v46 }
 0x255   : > { %v993_v4 = vpop.f32.mrf.mxu1 }
 0x256   : > { %v994_v5 = vadd.f32 %v3854_v46, %v993_v4  ;;  %v1085_v8 = vmax.f32 %v999_v3, 0.0 }
 0x258   : > { %v1084_v7 = vmax.f32 %v994_v5, 0.0 }
 0x25a   : > { %2793 = vmatprep.mubr.f32.mxu0 %v1084_v7 }
 0x25b   : > { %v2612_v9 = vpop.f32.mrf.mxu1  ;;  %2794 = vmatmul.mubr.f32.gmra.mxu0 %v1085_v8 }
 0x25c   : > { %v1009_v10 = vadd.f32 %v2612_v9, %v3854_v46 }
 0x25d   : > { %v1003_v12 = vpop.f32.mrf.mxu1 }
 0x25e   : > { %v1004_v52 = vadd.f32 %v3854_v46, %v1003_v12  ;;  %v1087_v14 = vmax.f32 %v1009_v10, 0.0 }
 0x260   : > { %v1086_v13 = vmax.f32 %v1004_v52, 0.0 }
 0x262   : > { %2796 = vmatprep.mubr.f32.mxu0 %v1086_v13 }
 0x263   : > { %v2615_v15 = vpop.f32.mrf.mxu1  ;;  %2797 = vmatmul.mubr.f32.gmra.mxu0 %v1087_v14 }
 0x264   : > { %v1019_v17 = vadd.f32 %v2615_v15, %v3854_v46 }
 0x265   : > { %v1013_v18 = vpop.f32.mrf.mxu1 }
 0x266   : > { %v1014_v19 = vadd.f32 %v3854_v46, %v1013_v18  ;;  %v1089_v21 = vmax.f32 %v1019_v17, 0.0 }
 0x268   : > { %v1088_v20 = vmax.f32 %v1014_v19, 0.0 }
 0x26a   : > { %2799 = vmatprep.mubr.f32.mxu0 %v1088_v20 }
 0x26b   : > { %v2618_v22 = vpop.f32.mrf.mxu1  ;;  %2800 = vmatmul.mubr.f32.gmra.mxu0 %v1089_v21 }
 0x26c   : > { %v1029_v23 = vadd.f32 %v2618_v22, %v3854_v46 }
 0x26d   : > { %v1023_v24 = vpop.f32.mrf.mxu1 }
 0x26e   : > { %v1024_v25 = vadd.f32 %v3854_v46, %v1023_v24  ;;  %v1091_v27 = vmax.f32 %v1029_v23, 0.0 }
 0x270   : > { %v1090_v26 = vmax.f32 %v1024_v25, 0.0 }
 0x272   : > { %2802 = vmatprep.mubr.f32.mxu0 %v1090_v26 }
 0x273   : > { %v2621_v28 = vpop.f32.mrf.mxu1  ;;  %2803 = vmatmul.mubr.f32.gmra.mxu0 %v1091_v27 }
 0x274   : > { %v1039_v29 = vadd.f32 %v2621_v28, %v3854_v46 }
 0x275   : > { %v1033_v30 = vpop.f32.mrf.mxu1 }
 0x276   : > { %v1034_v34 = vadd.f32 %v3854_v46, %v1033_v30  ;;  %v1093_v32 = vmax.f32 %v1039_v29, 0.0 }
 0x278   : > { %v1092_v31 = vmax.f32 %v1034_v34, 0.0 }
 0x27a   : > { %2805 = vmatprep.mubr.f32.mxu0 %v1092_v31 }
 0x27b   : > { %2806 = vmatmul.mubr.f32.gmra.mxu0 %v1093_v32  ;;  %v3868_v41 = vpop.f32.mrf.mxu1 }
 0x27d   : > { %v3870_v33 = vpop.f32.mrf.mxu1 }
 0x283   : > { %v3872_v35 = vpop.f32.mrf.mxu1 }
 0x285   : > { %v3874_v36 = vpop.f32.mrf.mxu1 }
 0x28b   : > { %v3876_v37 = vpop.f32.mrf.mxu1 }
 0x28d   : > { %v3878_v38 = vpop.f32.mrf.mxu1 }
 0x293   : > { %v3880_v39 = vpop.f32.mrf.mxu1 }
 0x295   : > { %v3882_v40 = vpop.f32.mrf.mxu1 }
 0x297   : > { %v2668_v43 = vpop.f32.mrf.mxu1 }
 0x298   : > { %v1391_v44 = vadd.f32 %v2668_v43, %v3887_v42 }
 0x299   : > { %v1385_v47 = vpop.f32.mrf.mxu1 }
 0x29a   : > { %v1386_v54 = vadd.f32 %v3887_v42, %v1385_v47  ;;  %v1485_v60 = vmax.f32 %v1391_v44, 0.0 }
 0x29b   : > { %v2671_v55 = vpop.f32.mrf.mxu1 }
 0x29c   : > { %v1484_v58 = vmax.f32 %v1386_v54, 0.0  ;;  %v1401_v61 = vadd.f32 %v2671_v55, %v3887_v42 }
 0x29d   : > { %v1395_v63 = vpop.f32.mrf.mxu1 }
 0x29e   : > { %v1396_v3 = vadd.f32 %v3887_v42, %v1395_v63  ;;  %2728 = vmatprep.mubr.f32.mxu1 %v1484_v58  ;;  %v1487_v7 = vmax.f32 %v1401_v61, 0.0  ;;  %v1049_v63 = vadd.f32 %v3868_v41, %v3854_v46  ;;  %v1069_v41 = vadd.f32 %v3876_v37, %v3854_v46 }
 0x29f   : > { %v2674_v4 = vpop.f32.mrf.mxu1  ;;  %2729 = vmatmul.mubr.f32.vlgmr.msra.gmra.mxu1 %v1485_v60  ;;  %v1044_v60 = vadd.f32 %v3854_v46, %v3870_v33  ;;  %v1059_v33 = vadd.f32 %v3872_v35, %v3854_v46  ;;  %v1079_v35 = vadd.f32 %v3880_v39, %v3854_v46 }
 0x2a0   : > { %v1486_v5 = vmax.f32 %v1396_v3, 0.0  ;;  %2836 = vmatpush3.msra.mxu1 %v3711_v48  ;;  %v1411_v8 = vadd.f32 %v2674_v4, %v3887_v42  ;;  %v1054_v4 = vadd.f32 %v3854_v46, %v3874_v36  ;;  %v1074_v36 = vadd.f32 %v3854_v46, %v3882_v40  ;;  %v3959_v40 = vld [vmem:[%s4167_s12] ss:$0 sm:$0xff] }
 0x2a1   : > { %v1405_v9 = vpop.f32.mrf.mxu1  ;;  %2821 = vmatprep.subr.mxu1 %v3713_v49  ;;  %v1094_v3 = vmax.f32 %v1044_v60, 0.0 }
 0x2a2   : > { %v1406_v10 = vadd.f32 %v3887_v42, %v1405_v9  ;;  %2731 = vmatprep.mubr.f32.mxu1 %v1486_v5  ;;  %2837 = vmatpush3.msra.mxu1 %v3713_v49  ;;  %v1489_v13 = vmax.f32 %v1411_v8, 0.0  ;;  %v1095_v5 = vmax.f32 %v1049_v63, 0.0  ;;  %v1099_v9 = vmax.f32 %v1069_v41, 0.0 }
 0x2a3   : > { %v2677_v12 = vpop.f32.mrf.mxu1  ;;  %2732 = vmatmul.mubr.f32.gmra.mxu1 %v1487_v7  ;;  %2822 = vmatprep.subr.mxu1 %v3717_v50  ;;  %v1097_v7 = vmax.f32 %v1059_v33, 0.0 }
 0x2a4   : > { %v1488_v52 = vmax.f32 %v1406_v10, 0.0  ;;  %2838 = vmatpush3.msra.mxu1 %v3717_v50  ;;  %v1421_v48 = vadd.f32 %v2677_v12, %v3887_v42  ;;  %v1100_v10 = vmax.f32 %v1074_v36, 0.0 }
 0x2a5   : > { %v1415_v14 = vpop.f32.mrf.mxu1  ;;  %2823 = vmatprep.subr.mxu1 %v3721_v51 }
 0x2a6   : > { %v1416_v15 = vadd.f32 %v3887_v42, %v1415_v14  ;;  %2734 = vmatprep.mubr.f32.mxu1 %v1488_v52  ;;  %2839 = vmatpush3.msra.mxu1 %v3721_v51  ;;  %v1491_v18 = vmax.f32 %v1421_v48, 0.0 }
 0x2a7   : > { %v2680_v17 = vpop.f32.mrf.mxu1  ;;  %2735 = vmatmul.mubr.f32.gmra.mxu1 %v1489_v13  ;;  %2824 = vmatprep.subr.mxu1 %v3730_v53 }
 0x2a8   : > { %v1490_v49 = vmax.f32 %v1416_v15, 0.0  ;;  %2840 = vmatpush3.msra.mxu1 %v3730_v53  ;;  %v1431_v50 = vadd.f32 %v2680_v17, %v3887_v42 }
 0x2a9   : > { %v1425_v19 = vpop.f32.mrf.mxu1  ;;  %2825 = vmatprep.subr.mxu1 %v3735_v56 }
 0x2aa   : > { %v1426_v20 = vadd.f32 %v3887_v42, %v1425_v19  ;;  %2737 = vmatprep.mubr.f32.mxu1 %v1490_v49  ;;  %2841 = vmatpush3.msra.mxu1 %v3735_v56  ;;  %v1493_v22 = vmax.f32 %v1431_v50, 0.0  ;;  %v3965_v50 = vld [vmem:[%s4191_s20] ss:$0 sm:$0xff] }
 0x2ab   : > { %v2683_v21 = vpop.f32.mrf.mxu1  ;;  %2738 = vmatmul.mubr.f32.gmra.mxu1 %v1491_v18  ;;  %2826 = vmatprep.subr.mxu1 %v3739_v59 }
 0x2ac   : > { %v1492_v51 = vmax.f32 %v1426_v20, 0.0  ;;  %2842 = vmatpush3.msra.mxu1 %v3739_v59  ;;  %v1441_v53 = vadd.f32 %v2683_v21, %v3887_v42 }
 0x2ad   : > { %v1435_v23 = vpop.f32.mrf.mxu1  ;;  %2827 = vmatprep.subr.mxu1 %v3744_v62 }
 0x2ae   : > { %v1436_v24 = vadd.f32 %v3887_v42, %v1435_v23  ;;  %2740 = vmatprep.mubr.f32.mxu1 %v1492_v51  ;;  %2843 = vmatpush3.msra.mxu1 %v3744_v62  ;;  %v1495_v26 = vmax.f32 %v1441_v53, 0.0 }
 0x2af   : > { %v2686_v25 = vpop.f32.mrf.mxu1  ;;  %2741 = vmatmul.mubr.f32.gmra.mxu1 %v1493_v22  ;;  %2828 = vmatprep.subr.mxu1 %v3748_v2 }
 0x2b0   : > { %v1494_v56 = vmax.f32 %v1436_v24, 0.0  ;;  %2844 = vmatpush3.msra.mxu1 %v3748_v2  ;;  %v1451_v59 = vadd.f32 %v2686_v25, %v3887_v42 }
 0x2b1   : > { %v1445_v27 = vpop.f32.mrf.mxu1  ;;  %2829 = vmatprep.subr.mxu1 %v3753_v6 }
 0x2b2   : > { %v1446_v28 = vadd.f32 %v3887_v42, %v1445_v27  ;;  %2743 = vmatprep.mubr.f32.mxu1 %v1494_v56  ;;  %2845 = vmatpush3.msra.mxu1 %v3753_v6  ;;  %v1497_v30 = vmax.f32 %v1451_v59, 0.0 }
 0x2b3   : > { %v2689_v29 = vpop.f32.mrf.mxu1  ;;  %2744 = vmatmul.mubr.f32.gmra.mxu1 %v1495_v26  ;;  %2830 = vmatprep.subr.mxu1 %v3758_v11 }
 0x2b4   : > { %v1496_v62 = vmax.f32 %v1446_v28, 0.0  ;;  %2846 = vmatpush3.msra.mxu1 %v3758_v11  ;;  %v1461_v2 = vadd.f32 %v2689_v29, %v3887_v42 }
 0x2b5   : > { %v1455_v34 = vpop.f32.mrf.mxu1  ;;  %2831 = vmatprep.subr.mxu1 %v3763_v16 }
 0x2b6   : > { %v1456_v31 = vadd.f32 %v3887_v42, %v1455_v34  ;;  %2746 = vmatprep.mubr.f32.mxu1 %v1496_v62  ;;  %2847 = vmatpush3.msra.mxu1 %v3763_v16  ;;  %v1499_v43 = vmax.f32 %v1461_v2, 0.0 }
 0x2b7   : > { %v2692_v32 = vpop.f32.mrf.mxu1  ;;  %2747 = vmatmul.mubr.f32.gmra.mxu1 %v1497_v30  ;;  %2832 = vmatprep.subr.mxu1 %v3793_v45 }
 0x2b8   : > { %v1498_v6 = vmax.f32 %v1456_v31, 0.0  ;;  %2848 = vmatpush3.msra.mxu1 %v3793_v45  ;;  %v1471_v11 = vadd.f32 %v2692_v32, %v3887_v42 }
 0x2b9   : > { %v1465_v44 = vpop.f32.mrf.mxu1  ;;  %2833 = vmatprep.subr.mxu1 %v3800_v57 }
 0x2ba   : > { %v1466_v47 = vadd.f32 %v3887_v42, %v1465_v44  ;;  %2749 = vmatprep.mubr.f32.mxu1 %v1498_v6  ;;  %2849 = vmatpush3.msra.mxu1 %v3800_v57  ;;  %v1501_v55 = vmax.f32 %v1471_v11, 0.0 }
 0x2bb   : > { %v2695_v54 = vpop.f32.mrf.mxu1  ;;  %2750 = vmatmul.mubr.f32.gmra.mxu1 %v1499_v43  ;;  %2834 = vmatprep.subr.mxu1 %v3805_v0 }
 0x2bc   : > { %v1500_v16 = vmax.f32 %v1466_v47, 0.0  ;;  %2850 = vmatpush3.msra.mxu1 %v3805_v0  ;;  %v1481_v45 = vadd.f32 %v2695_v54, %v3887_v42 }
 0x2bd   : > { %v1475_v58 = vpop.f32.mrf.mxu1  ;;  %2835 = vmatprep.subr.mxu1 %v3811_v1 }
 0x2be   : > { %v1476_v61 = vadd.f32 %v3887_v42, %v1475_v58  ;;  %2752 = vmatprep.mubr.f32.mxu1 %v1500_v16  ;;  %2851 = vmatpush3.msra.mxu1 %v3811_v1  ;;  %v1503_v0 = vmax.f32 %v1481_v45, 0.0  ;;  %v1096_v42 = vmax.f32 %v1054_v4, 0.0  ;;  %v1064_v1 = vadd.f32 %v3854_v46, %v3878_v38 }
 0x2bf   : > { %2753 = vmatmul.mubr.f32.gmra.mxu1 %v1501_v55  ;;  %v1101_v38 = vmax.f32 %v1079_v35, 0.0 }
 0x2c0   : > { %v1502_v57 = vmax.f32 %v1476_v61, 0.0  ;;  %v1098_v8 = vmax.f32 %v1064_v1, 0.0 }
 0x2c2   : > { %2755 = vmatprep.mubr.f32.mxu1 %v1502_v57 }
 0x2c3   : > { %2756 = vmatmul.mubr.f32.gmra.mxu1 %v1503_v0 }
 0x2c4   : > { %2808 = vmatprep.mubr.f32.mxu1 %v1094_v3 }
 0x2c7   : > { %2809 = vmatmul.mubr.f32.vlgmr.msra.gmra.mxu1 %v1095_v5 }
 0x2c8   : > { %2811 = vmatprep.mubr.f32.mxu1 %v1096_v42 }
 0x2cb   : > { %2812 = vmatmul.mubr.f32.gmra.mxu1 %v1097_v7 }
 0x2cc   : > { %2814 = vmatprep.mubr.f32.mxu1 %v1098_v8 }
 0x2cf   : > { %2815 = vmatmul.mubr.f32.gmra.mxu1 %v1099_v9 }
 0x2d0   : > { %2817 = vmatprep.mubr.f32.mxu1 %v1100_v10 }
 0x2d3   : > { %2818 = vmatmul.mubr.f32.gmra.mxu1 %v1101_v38 }
 0x313   : > { %v2792_v12 = vpop.f32.mrf.mxu0 }
 0x315   : > { %v1767_v52 = vpop.f32.mrf.mxu0 }
 0x31b   : > { %v2795_v13 = vpop.f32.mrf.mxu0 }
 0x31d   : > { %v1777_v48 = vpop.f32.mrf.mxu0 }
 0x323   : > { %v2798_v37 = vpop.f32.mrf.mxu0 }
 0x325   : > { %v1787_v49 = vpop.f32.mrf.mxu0 }
 0x32b   : > { %v2801_v51 = vpop.f32.mrf.mxu0 }
 0x32d   : > { %v1797_v29 = vpop.f32.mrf.mxu0 }
 0x333   : > { %v2804_v2 = vpop.f32.mrf.mxu0 }
 0x335   : > { %v1807_v16 = vpop.f32.mrf.mxu0 }
 0x33b   : > { %v2807_v0 = vpop.f32.mrf.mxu0 }
 0x33d   : > { %v1817_v9 = vpop.f32.mrf.mxu0 }
 0x35f   : > { %v2730_v14 = vpop.f32.mrf.mxu1 }
 0x360   : > { %v1773_v15 = vadd.f32 %v2792_v12, %v2730_v14 }
 0x361   : > { %v1602_v17 = vpop.f32.mrf.mxu1 }
 0x362   : > { %v1874_v46 = vadd.f32 %v3959_v40, %v1773_v15  ;;  %v1768_v39 = vadd.f32 %v1767_v52, %v1602_v17 }
 0x363   : > { %v2733_v18 = vpop.f32.mrf.mxu1 }
 0x364   : > { %v1894_v19 = vmax.f32 %v1874_v46, 0.0  ;;  %v1873_v20 = vadd.f32 %v3959_v40, %v1768_v39  ;;  %v1783_v21 = vadd.f32 %v2795_v13, %v2733_v18 }
 0x365   : > { %v1612_v22 = vpop.f32.mrf.mxu1 }
 0x366   : > { %v1893_v53 = vmax.f32 %v1873_v20, 0.0  ;;  %v1876_v23 = vadd.f32 %v3959_v40, %v1783_v21  ;;  %v1778_v24 = vadd.f32 %v1777_v48, %v1612_v22  ;;  %v1921_v25 = vmul.f32 %v3965_v50, %v1894_v19 }
 0x367   : > { %v2736_v56 = vpop.f32.mrf.mxu1 }
 0x368   : > { %v1896_v26 = vmax.f32 %v1876_v23, 0.0  ;;  %v1875_v59 = vadd.f32 %v3959_v40, %v1778_v24  ;;  %v1793_v27 = vadd.f32 %v2798_v37, %v2736_v56  ;;  %1942 = vadd.xlane.f32.xlu1 %v1921_v25  ;;  %v1920_v28 = vmul.f32 %v3965_v50, %v1893_v53 }
 0x369   : > { %v1622_v62 = vpop.f32.mrf.mxu1 }
 0x36a   : > { %v1788_v30 = vadd.f32 %v1787_v49, %v1622_v62  ;;  %1940 = vadd.xlane.f32.xlu0 %v1920_v28  ;;  %v1878_v34 = vadd.f32 %v3959_v40, %v1793_v27  ;;  %v1895_v32 = vmax.f32 %v1875_v59, 0.0  ;;  %v1923_v11 = vmul.f32 %v3965_v50, %v1896_v26 }
 0x36b   : > { %v2739_v31 = vpop.f32.mrf.mxu1 }
 0x36c   : > { %v1877_v6 = vadd.f32 %v3959_v40, %v1788_v30  ;;  %v1803_v43 = vadd.f32 %v2801_v51, %v2739_v31  ;;  %v1898_v55 = vmax.f32 %v1878_v34, 0.0  ;;  %v1922_v63 = vmul.f32 %v3965_v50, %v1895_v32 }
 0x36d   : > { %v1632_v44 = vpop.f32.mrf.mxu1 }
 0x36e   : > { %v1897_v47 = vmax.f32 %v1877_v6, 0.0  ;;  %v1798_v54 = vadd.f32 %v1797_v29, %v1632_v44  ;;  %1946 = vadd.xlane.f32.xlu0 %v1923_v11  ;;  %v1880_v45 = vadd.f32 %v3959_v40, %v1803_v43  ;;  %v1925_v1 = vmul.f32 %v3965_v50, %v1898_v55 }
 0x36f   : > { %v2742_v58 = vpop.f32.mrf.mxu1 }
 0x370   : > { %v1879_v60 = vadd.f32 %v3959_v40, %v1798_v54  ;;  %v1813_v61 = vadd.f32 %v2804_v2, %v2742_v58  ;;  %v1924_v57 = vmul.f32 %v3965_v50, %v1897_v47  ;;  %v1900_v33 = vmax.f32 %v1880_v45, 0.0 }
 0x371   : > { %v1642_v3 = vpop.f32.mrf.mxu1 }
 0x372   : > { %v1899_v4 = vmax.f32 %v1879_v60, 0.0  ;;  %v1808_v5 = vadd.f32 %v1807_v16, %v1642_v3  ;;  %1948 = vadd.xlane.f32.xlu1 %v1924_v57  ;;  %1944 = vadd.xlane.f32.xlu0 %v1922_v63  ;;  %v1882_v7 = vadd.f32 %v3959_v40, %v1813_v61  ;;  %v1927_v52 = vmul.f32 %v3965_v50, %v1900_v33 }
 0x373   : > { %v2745_v42 = vpop.f32.mrf.mxu1 }
 0x374   : > { %v1881_v41 = vadd.f32 %v3959_v40, %v1808_v5  ;;  %v1823_v8 = vadd.f32 %v2807_v0, %v2745_v42  ;;  %v1926_v36 = vmul.f32 %v3965_v50, %v1899_v4  ;;  %v1902_v13 = vmax.f32 %v1882_v7, 0.0 }
 0x375   : > { %v1652_v35 = vpop.f32.mrf.mxu1 }
 0x376   : > { %v1901_v10 = vmax.f32 %v1881_v41, 0.0  ;;  %v1818_v38 = vadd.f32 %v1817_v9, %v1652_v35  ;;  %1952 = vadd.xlane.f32.xlu1 %v1926_v36  ;;  %1950 = vadd.xlane.f32.xlu0 %v1925_v1  ;;  %v1884_v48 = vadd.f32 %v3959_v40, %v1823_v8  ;;  %v1929_v18 = vmul.f32 %v3965_v50, %v1902_v13  ;;  %v2410_v9 = vld [vmem:[#allocation2] ss:$0 sm:$0xff] }
 0x377   : > { %v2748_v12 = vpop.f32.mrf.mxu1 }
 0x378   : > { %v1883_v37 = vadd.f32 %v3959_v40, %v1818_v38  ;;  %v1928_v14 = vmul.f32 %v3965_v50, %v1901_v10  ;;  %v1904_v39 = vmax.f32 %v1884_v48, 0.0 }
 0x379   : > { %v1662_v15 = vpop.f32.mrf.mxu1 }
 0x37a   : > { %v1903_v17 = vmax.f32 %v1883_v37, 0.0  ;;  %1956 = vadd.xlane.f32.xlu1 %v1928_v14  ;;  %1954 = vadd.xlane.f32.xlu0 %v1927_v52  ;;  %v1931_v21 = vmul.f32 %v3965_v50, %v1904_v39 }
 0x37b   : > { %v2751_v46 = vpop.f32.mrf.mxu1 }
 0x37c   : > { %v1930_v49 = vmul.f32 %v3965_v50, %v1903_v17 }
 0x37d   : > { %v1672_v19 = vpop.f32.mrf.mxu1 }
 0x37e   : > { %1960 = vadd.xlane.f32.xlu1 %v1930_v49  ;;  %1958 = vadd.xlane.f32.xlu0 %v1929_v18 }
 0x37f   : > { %v2754_v20 = vpop.f32.mrf.mxu1 }
 0x381   : > { %v1682_v51 = vpop.f32.mrf.mxu1 }
 0x382   : > { %1962 = vadd.xlane.f32.xlu0 %v1931_v21 }
 0x383   : > { %v2757_v22 = vpop.f32.mrf.mxu1 }
 0x385   : > { %v1692_v53 = vpop.f32.mrf.mxu1 }
 0x387   : > { %v2810_v23 = vpop.f32.mrf.mxu1 }
 0x388   : > { %v1833_v24 = vadd.f32 %v2810_v23, %v2748_v12 }
 0x389   : > { %v1827_v25 = vpop.f32.mrf.mxu1 }
 0x38a   : > { %v1886_v56 = vadd.f32 %v3959_v40, %v1833_v24  ;;  %v1828_v26 = vadd.f32 %v1827_v25, %v1662_v15 }
 0x38b   : > { %v2813_v59 = vpop.f32.mrf.mxu1 }
 0x38c   : > { %v1906_v27 = vmax.f32 %v1886_v56, 0.0  ;;  %v1885_v28 = vadd.f32 %v3959_v40, %v1828_v26  ;;  %v1843_v29 = vadd.f32 %v2813_v59, %v2751_v46 }
 0x38d   : > { %v1837_v62 = vpop.f32.mrf.mxu1 }
 0x38e   : > { %v1905_v30 = vmax.f32 %v1885_v28, 0.0  ;;  %v1888_v2 = vadd.f32 %v3959_v40, %v1843_v29  ;;  %v1838_v34 = vadd.f32 %v1837_v62, %v1672_v19  ;;  %v1933_v31 = vmul.f32 %v3965_v50, %v1906_v27 }
 0x38f   : > { %v2816_v32 = vpop.f32.mrf.mxu1 }
 0x390   : > { %v1908_v6 = vmax.f32 %v1888_v2, 0.0  ;;  %v1887_v43 = vadd.f32 %v3959_v40, %v1838_v34  ;;  %v1853_v11 = vadd.f32 %v2816_v32, %v2754_v20  ;;  %1966 = vadd.xlane.f32.xlu0 %v1933_v31  ;;  %v1932_v44 = vmul.f32 %v3965_v50, %v1905_v30 }
 0x391   : > { %v1847_v47 = vpop.f32.mrf.mxu1 }
 0x392   : > { %v1907_v54 = vmax.f32 %v1887_v43, 0.0  ;;  %v1890_v16 = vadd.f32 %v3959_v40, %v1853_v11  ;;  %v1848_v55 = vadd.f32 %v1847_v47, %v1682_v51  ;;  %1964 = vadd.xlane.f32.xlu1 %v1932_v44  ;;  %v1935_v45 = vmul.f32 %v3965_v50, %v1908_v6 }
 0x393   : > { %v2819_v58 = vpop.f32.mrf.mxu1 }
 0x394   : > { %v1910_v60 = vmax.f32 %v1890_v16, 0.0  ;;  %v1889_v61 = vadd.f32 %v3959_v40, %v1848_v55  ;;  %v1863_v57 = vadd.f32 %v2819_v58, %v2757_v22  ;;  %1970 = vadd.xlane.f32.xlu0 %v1935_v45  ;;  %v1934_v63 = vmul.f32 %v3965_v50, %v1907_v54 }
 0x395   : > { %v1857_v0 = vpop.f32.mrf.mxu1 }
 0x396   : > { %v1909_v3 = vmax.f32 %v1889_v61, 0.0  ;;  %v1892_v4 = vadd.f32 %v3959_v40, %v1863_v57  ;;  %v1858_v5 = vadd.f32 %v1857_v0, %v1692_v53  ;;  %1968 = vadd.xlane.f32.xlu1 %v1934_v63  ;;  %v1937_v33 = vmul.f32 %v3965_v50, %v1910_v60 }
 0x398   : > { %v1912_v42 = vmax.f32 %v1892_v4, 0.0  ;;  %v1891_v1 = vadd.f32 %v3959_v40, %v1858_v5  ;;  %1974 = vadd.xlane.f32.xlu0 %v1937_v33  ;;  %v1936_v7 = vmul.f32 %v3965_v50, %v1909_v3 }
 0x39a   : > { %v1911_v41 = vmax.f32 %v1891_v1, 0.0  ;;  %1972 = vadd.xlane.f32.xlu1 %v1936_v7  ;;  %v1939_v8 = vmul.f32 %v3965_v50, %v1912_v42 }
 0x39c   : > { %1978 = vadd.xlane.f32.xlu0 %v1939_v8  ;;  %v1938_v36 = vmul.f32 %v3965_v50, %v1911_v41 }
 0x39e   : > { %1976 = vadd.xlane.f32.xlu1 %v1938_v36 }
 0x3f1   : > { %v1943_v35 = vpop.xlane.xlu1 %1942 }
 0x3f2   : > { %v1988_v10 = vadd.f32 %v2410_v9, %v1943_v35 }
 0x3f3   : > { %v1941_v38 = vpop.xlane.xlu0 %1940 }
 0x3f4   : > { %2009 = vst.msk [vmem:[%s4007_s16 + $0x8] sm:$0xff] %vm2007_vm0, %v1988_v10  ;;  %v1987_v40 = vadd.f32 %v2410_v9, %v1941_v38 }
 0x3f6   : > { %2008 = vst.msk [vmem:[%s4007_s16] sm:$0xff] %vm2007_vm0, %v1987_v40 }
 0x3f7   : > { %v1947_v50 = vpop.xlane.xlu0 %1946 }
 0x3f8   : > { %v1990_v12 = vadd.f32 %v2410_v9, %v1947_v50 }
 0x3fa   : > { %2011 = vst.msk [vmem:[%s4007_s16 + $0x18] sm:$0xff] %vm2007_vm0, %v1990_v12 }
 0x3fb   : > { %v1949_v52 = vpop.xlane.xlu1 %1948  ;;  %v1945_v13 = vpop.xlane.xlu0 %1944 }
 0x3fc   : > { %v1991_v48 = vadd.f32 %v2410_v9, %v1949_v52  ;;  %v1989_v37 = vadd.f32 %v2410_v9, %v1945_v13 }
 0x3fe   : > { %2012 = vst.msk [vmem:[%s4007_s16 + $0x20] sm:$0xff] %vm2007_vm0, %v1991_v48  ;;  %2010 = vst.msk [vmem:[%s4007_s16 + $0x10] sm:$0xff] %vm2007_vm0, %v1989_v37 }
 0x3ff   : > { %v1953_v14 = vpop.xlane.xlu1 %1952  ;;  %v1951_v15 = vpop.xlane.xlu0 %1950 }
 0x400   : > { %v1993_v17 = vadd.f32 %v2410_v9, %v1953_v14  ;;  %v1992_v46 = vadd.f32 %v2410_v9, %v1951_v15 }
 0x402   : > { %2014 = vst.msk [vmem:[%s4007_s16 + $0x30] sm:$0xff] %vm2007_vm0, %v1993_v17  ;;  %2013 = vst.msk [vmem:[%s4007_s16 + $0x28] sm:$0xff] %vm2007_vm0, %v1992_v46 }
 0x403   : > { %v1957_v39 = vpop.xlane.xlu1 %1956  ;;  %v1955_v49 = vpop.xlane.xlu0 %1954 }
 0x404   : > { %v1995_v18 = vadd.f32 %v2410_v9, %v1957_v39  ;;  %v1994_v19 = vadd.f32 %v2410_v9, %v1955_v49 }
 0x406   : > { %2016 = vst.msk [vmem:[%s4007_s16 + $0x40] sm:$0xff] %vm2007_vm0, %v1995_v18  ;;  %2015 = vst.msk [vmem:[%s4007_s16 + $0x38] sm:$0xff] %vm2007_vm0, %v1994_v19 }
 0x407   : > { %v1961_v20 = vpop.xlane.xlu1 %1960  ;;  %v1959_v21 = vpop.xlane.xlu0 %1958 }
 0x408   : > { %v1997_v51 = vadd.f32 %v2410_v9, %v1961_v20  ;;  %v1996_v22 = vadd.f32 %v2410_v9, %v1959_v21 }
 0x40a   : > { %2018 = vst.msk [vmem:[%s4007_s16 + $0x50] sm:$0xff] %vm2007_vm0, %v1997_v51  ;;  %2017 = vst.msk [vmem:[%s4007_s16 + $0x48] sm:$0xff] %vm2007_vm0, %v1996_v22 }
 0x40b   : > { %v1963_v53 = vpop.xlane.xlu0 %1962 }
 0x40c   : > { %v1998_v23 = vadd.f32 %v2410_v9, %v1963_v53 }
 0x40e   : > { %2019 = vst.msk [vmem:[%s4007_s16 + $0x58] sm:$0xff] %vm2007_vm0, %v1998_v23 }
 0x419   : > { %v1967_v24 = vpop.xlane.xlu0 %1966 }
 0x41a   : > { %v2000_v25 = vadd.f32 %v2410_v9, %v1967_v24 }
 0x41b   : > { %v1965_v56 = vpop.xlane.xlu1 %1964 }
 0x41c   : > { %2021 = vst.msk [vmem:[%s4007_s16 + $0x68] sm:$0xff] %vm2007_vm0, %v2000_v25  ;;  %v1999_v26 = vadd.f32 %v2410_v9, %v1965_v56 }
 0x41d   : > { %v1971_v59 = vpop.xlane.xlu0 %1970 }
 0x41e   : > { %2020 = vst.msk [vmem:[%s4007_s16 + $0x60] sm:$0xff] %vm2007_vm0, %v1999_v26  ;;  %v2002_v27 = vadd.f32 %v2410_v9, %v1971_v59 }
 0x41f   : > { %v1969_v28 = vpop.xlane.xlu1 %1968 }
 0x420   : > { %2023 = vst.msk [vmem:[%s4007_s16 + $0x78] sm:$0xff] %vm2007_vm0, %v2002_v27  ;;  %v2001_v29 = vadd.f32 %v2410_v9, %v1969_v28 }
 0x421   : > { %v1975_v62 = vpop.xlane.xlu0 %1974 }
 0x422   : > { %2022 = vst.msk [vmem:[%s4007_s16 + $0x70] sm:$0xff] %vm2007_vm0, %v2001_v29  ;;  %v2004_v30 = vadd.f32 %v2410_v9, %v1975_v62 }
 0x423   : > { %v1973_v2 = vpop.xlane.xlu1 %1972 }
 0x424   : > { %2025 = vst.msk [vmem:[%s4007_s16 + $0x88] sm:$0xff] %vm2007_vm0, %v2004_v30  ;;  %v2003_v34 = vadd.f32 %v2410_v9, %v1973_v2 }
 0x425   : > { %v1979_v31 = vpop.xlane.xlu0 %1978 }
 0x426   : > { %2024 = vst.msk [vmem:[%s4007_s16 + $0x80] sm:$0xff] %vm2007_vm0, %v2003_v34  ;;  %v2006_v32 = vadd.f32 %v2410_v9, %v1979_v31  ;;  %2034 = sbr.rel (!%p4193_p2) target bundleno = 1123 (0x463), region = 104 }
 0x427   : > { %v1977_v6 = vpop.xlane.xlu1 %1976 }
 0x428   : > { %2027 = vst.msk [vmem:[%s4007_s16 + $0x98] sm:$0xff] %vm2007_vm0, %v2006_v32  ;;  %v2005_v43 = vadd.f32 %v2410_v9, %v1977_v6 }
 0x42a   : > { %2026 = vst.msk [vmem:[%s4007_s16 + $0x90] sm:$0xff] %vm2007_vm0, %v2005_v43 }
 0x42b   : > { %s4206_s19 = smov (!%p2037_p3, %s2036_s19), 20 }
 0x42c   : > { %s2411_s15 = sshll.u32 %s4206_s19, 7 }
 0x42d   : > { %p2414_p6 = scmp.eq.s32.totalorder %s2411_s15, 0 }
 0x42e   : > { %3002 = sdivrem.u32 (!%p2414_p6), %s4206_s19, 20 }
 0x42f   : > { %2045 = sbr.rel (%p2414_p6) target bundleno = 1123 (0x463), region = 108 }
 0x437   : > { %s4062_s18 = spop.drf %3002 }
 0x438   : > { %p2415_p7 = scmp.le.s32.totalorder %s4062_s18, 0 }
 0x439   : > { %s4195_s14 = smov (!%p2415_p7), %s4056_s30  ;;  %s4196_s27 = smov (!%p2415_p7), %s4007_s16 }
 0x43a   : > { %2294 = sbr.rel (%p2415_p7) target bundleno = 1098 (0x44a), region = 193  ;;  %s4071_s26 = smov (!%p2415_p7), 0  }
 0x43b   : > { %s4073_s28 = smov (!%p2415_p7), 0  }
 0x43f LB: >> { %v2148_v11 = vld [vmem:[%s3218_s27] sm:$0xff]  ;;  %v2150_v44 = vld [vmem:[%s3218_s27 + $0x8] sm:$0xff]  ;;  %v2152_v47 = vld [vmem:[%s3218_s27 + $0x10] sm:$0xff]  ;;  %s2188_s20 = sadd.s32 1, %s3222_s26  ;;  %s2142_s28 = sadd.s32 1, %s3226_s28   ;;  %s3226_s28 = sphi %s4073_s28, %s2142_s28   ;;  %s3222_s26 = sphi %s4071_s26, %s4197_s26   ;;  %s3218_s27 = sphi %s4196_s27, %s2193_s27   ;;  %s3214_s14 = sphi %s4195_s14, %s2194_s14  }
 0x440   : >> { %2149 = vst [vmem:[%s3214_s14] sm:$0xff] %v2148_v11  ;;  %2151 = vst [vmem:[%s3214_s14 + $0x8] sm:$0xff] %v2150_v44  ;;  %v2154_v54 = vld [vmem:[%s3218_s27 + $0x18] sm:$0xff]  ;;  %v2156_v16 = vld [vmem:[%s3218_s27 + $0x20] sm:$0xff]  ;;  %p2189_p9 = scmp.ge.s32.totalorder %s2188_s20, %s4062_s18  ;;  %p2141_p0 = scmp.ge.s32.totalorder %s2142_s28, %s4062_s18 }
 0x441   : >> { %2153 = vst [vmem:[%s3214_s14 + $0x10] sm:$0xff] %v2152_v47  ;;  %v2158_v55 = vld [vmem:[%s3218_s27 + $0x28] sm:$0xff]  ;;  %2155 = vst [vmem:[%s3214_s14 + $0x18] sm:$0xff] %v2154_v54  ;;  %v2160_v45 = vld [vmem:[%s3218_s27 + $0x30] sm:$0xff] }
 0x442   : >> { %2157 = vst [vmem:[%s3214_s14 + $0x20] sm:$0xff] %v2156_v16  ;;  %2159 = vst [vmem:[%s3214_s14 + $0x28] sm:$0xff] %v2158_v55  ;;  %v2162_v58 = vld [vmem:[%s3218_s27 + $0x38] sm:$0xff]  ;;  %v2164_v60 = vld [vmem:[%s3218_s27 + $0x40] sm:$0xff]  ;;  %s4208_s20 = smov (%p2189_p9, %s2188_s20), 0 }
 0x443   : >> { %2161 = vst [vmem:[%s3214_s14 + $0x30] sm:$0xff] %v2160_v45  ;;  %2163 = vst [vmem:[%s3214_s14 + $0x38] sm:$0xff] %v2162_v58  ;;  %v2166_v61 = vld [vmem:[%s3218_s27 + $0x48] sm:$0xff]  ;;  %v2168_v57 = vld [vmem:[%s3218_s27 + $0x50] sm:$0xff]  ;;  %s2191_s17 = smul.u32 160, %s4208_s20  ;;  %s4197_s26 = smov %s4208_s20 }
 0x444   : >> { %2165 = vst [vmem:[%s3214_s14 + $0x40] sm:$0xff] %v2164_v60  ;;  %v2170_v63 = vld [vmem:[%s3218_s27 + $0x58] sm:$0xff]  ;;  %2167 = vst [vmem:[%s3214_s14 + $0x48] sm:$0xff] %v2166_v61  ;;  %v2172_v0 = vld [vmem:[%s3218_s27 + $0x60] sm:$0xff] }
 0x445   : >> { %2169 = vst [vmem:[%s3214_s14 + $0x50] sm:$0xff] %v2168_v57  ;;  %2171 = vst [vmem:[%s3214_s14 + $0x58] sm:$0xff] %v2170_v63  ;;  %v2174_v3 = vld [vmem:[%s3218_s27 + $0x68] sm:$0xff]  ;;  %v2176_v4 = vld [vmem:[%s3218_s27 + $0x70] sm:$0xff]  ;;  %2144 = sbr.rel (!%p2141_p0) target bundleno = 1087 (0x43f), region = 199 }
 0x446   : >> { %2173 = vst [vmem:[%s3214_s14 + $0x60] sm:$0xff] %v2172_v0  ;;  %2175 = vst [vmem:[%s3214_s14 + $0x68] sm:$0xff] %v2174_v3  ;;  %v2178_v5 = vld [vmem:[%s3218_s27 + $0x78] sm:$0xff]  ;;  %v2180_v33 = vld [vmem:[%s3218_s27 + $0x80] sm:$0xff] }
 0x447   : >> { %2177 = vst [vmem:[%s3214_s14 + $0x70] sm:$0xff] %v2176_v4  ;;  %v2182_v42 = vld [vmem:[%s3218_s27 + $0x88] sm:$0xff]  ;;  %2179 = vst [vmem:[%s3214_s14 + $0x78] sm:$0xff] %v2178_v5  ;;  %v2184_v1 = vld [vmem:[%s3218_s27 + $0x90] sm:$0xff] }
 0x448   : >> { %2181 = vst [vmem:[%s3214_s14 + $0x80] sm:$0xff] %v2180_v33  ;;  %2183 = vst [vmem:[%s3214_s14 + $0x88] sm:$0xff] %v2182_v42  ;;  %v2186_v7 = vld [vmem:[%s3218_s27 + $0x98] sm:$0xff]  ;;  %s2193_s27 = scalar_lea.vmem %s4007_s16, %s2191_s17 [#allocation11]  }
 0x449   : >> { %2185 = vst [vmem:[%s3214_s14 + $0x90] sm:$0xff] %v2184_v1  ;;  %2187 = vst [vmem:[%s3214_s14 + $0x98] sm:$0xff] %v2186_v7  ;;  %s2194_s14 = scalar_lea.vmem %s4056_s30, %s2191_s17  }
 0x44a PF: > { %3004 = sdivrem.u32 %s4206_s19, 20 }
 0x44b   : > { %s2416_s23 = smul.u32 160, %s4062_s18 }
 0x44d   : > { %s2199_s29 = scalar_lea.vmem %s4007_s16, %s2416_s23 [#allocation11]   ;;  %s2201_s13 = scalar_lea.vmem %s4056_s30, %s2416_s23  }
 0x453   : > { %s3005_s25 = spop.drf %3004 }
 0x454   : > { %p2418_p13 = scmp.le.s32.totalorder %s3005_s25, 0 }
 0x455   : > { %s3228_s24 = smov (!%p2418_p13), %s2201_s13   ;;  %s3232_s15 = smov (!%p2418_p13), %s2199_s29  }
 0x456   : > { %2308 = sbr.rel (%p2418_p13) target bundleno = 1123 (0x463), region = 204  ;;  %s3236_s17 = smov (!%p2418_p13), 0  }
 0x457   : > { %s3240_s0 = smov (!%p2418_p13), 0  }
 0x45b LB: >> { %v2211_v41 = vld [vmem:[%s3234_s15] sm:$0xff]  ;;  %s2213_s14 = sadd.s32 1, %s3238_s17  ;;  %s2205_s0 = sadd.s32 1, %s3242_s0   ;;  %s3242_s0 = sphi %s3240_s0, %s2205_s0   ;;  %s3238_s17 = sphi %s3236_s17, %s3237_s17   ;;  %s3234_s15 = sphi %s3232_s15, %s2218_s15   ;;  %s3230_s24 = sphi %s3228_s24, %s2219_s24  }
 0x45c   : >> { %2212 = vst [vmem:[%s3230_s24] sm:$0xff] %v2211_v41  ;;  %p2214_p5 = scmp.ge.s32.totalorder %s2213_s14, %s3005_s25  ;;  %p2204_p1 = scmp.ge.s32.totalorder %s2205_s0, %s3005_s25 }
 0x45e   : >> { %s4210_s14 = smov (%p2214_p5, %s2213_s14), 0  ;;  %2207 = sbr.rel (!%p2204_p1) target bundleno = 1115 (0x45b), region = 210 }
 0x45f   : >> { %s2419_s16 = sshll.u32 %s4210_s14, 3  ;;  %s3237_s17 = smov %s4210_s14  }
 0x460   : >> { %s2218_s15 = scalar_lea.vmem %s2199_s29, %s2419_s16 [#allocation11]   ;;  %s2219_s24 = scalar_lea.vmem %s2201_s13, %s2419_s16  }
 0x463 PF: > { %s4198_s23 = sld [smem:[#allocation15_spill]]  ;;  %s4200_s20 = smov %s3202_s21 }
 0x464   : > { %s4199_s19 = sld [smem:[#allocation16_spill]]  ;;  %s4201_s21 = smov %s3206_s22 }
 0x469   : > { %p29_p10 = scmp.ge.s32.totalorder %s4198_s23, 4  }
 0x46a   : > { %s4202_s22 = smov %s4199_s19 }
 0x46b   :  { %31 = sbr.rel (!%p29_p10) target bundleno = 9 (0x9), region = 221 }
 0x470   :  { %2235 = vsyncpa [#allocation4], 1 }
 0x471   :  { %2237 = vsyncpa [#allocation4 + $0x1], 1 }
 0x472   :  { %2238 = vsyncpa [#allocation6], 1 }
 0x473   :  { %2239 = vsyncpa [#allocation9], 1 }

</bundles_post_ra>
